<compile_context>
chip_gen: v5e
topology: v5e:2x2
jax: 0.10.0
libtpu: 0.0.40
codegen_flags: <defaults>
</compile_context>

<pallas_src>
import jax
import jax.numpy as jnp
import numpy as np
from jax.experimental import pallas as pl
from jax.experimental.pallas import tpu as pltpu


def _make_rnn_classifier_kernel(L, T, Bp, H, matmul_dtype):
    """Builds the Pallas kernel body for a static config."""

    def kernel(*args):
        # ---- unpack refs: inputs..., output, scratch... ----
        x_ref = args[0]                       # (T*Bp, E) embedded input, time-major, flat
        idx = 1
        layer_refs = []
        for _ in range(L):
            layer_refs.append((args[idx], args[idx + 1], args[idx + 2]))
            idx += 3                          # wih_T (in,4H), whh_T (H,4H), bias (1,4H)
        fcw_ref = args[idx]                   # (2H, Op)
        fcb_ref = args[idx + 1]               # (1, Op)
        out_ref = args[idx + 2]               # (Bp, Op)
        seq_ref = args[idx + 3]               # scratch (T*Bp, H): layer output sequence
        pre_ref = args[idx + 4]               # scratch (T*Bp, 4H): hoisted input projection

        h_finals = []
        for l in range(L):
            wih_ref, whh_ref, b_ref = layer_refs[l]

            # ---- hoisted input projection: one throughput-shaped MXU call per layer ----
            if l == 0:
                in_flat = x_ref[...]                            # (T*Bp, E), already matmul_dtype
            else:
                in_flat = seq_ref[...].astype(matmul_dtype)     # (T*Bp, H)
            pre_ref[...] = (
                jnp.dot(in_flat, wih_ref[...], preferred_element_type=jnp.float32)
                + b_ref[...]
            )

            whh = whh_ref[...]                                  # (H, 4H), kept resident
            write_seq = l < L - 1                               # last layer: skip seq writes

            def step(t, carry, whh=whh, write_seq=write_seq):
                h, c = carry
                off = pl.multiple_of(t * Bp, Bp)                # sublane-aligned dynamic slice
                gates = pre_ref[pl.ds(off, Bp), :] + jnp.dot(
                    h.astype(matmul_dtype), whh,
                    preferred_element_type=jnp.float32)         # (Bp, 4H), layout [i|f|o|g]
                sig = jax.nn.sigmoid(gates[:, : 3 * H])         # single EUP block (i,f,o)
                g_g = jnp.tanh(gates[:, 3 * H:])                # single EUP block (g)
                i_g = sig[:, 0 * H:1 * H]
                f_g = sig[:, 1 * H:2 * H]
                o_g = sig[:, 2 * H:3 * H]
                c_new = f_g * c + i_g * g_g
                h_new = o_g * jnp.tanh(c_new)
                if write_seq:
                    seq_ref[pl.ds(off, Bp), :] = h_new          # feed next layer
                return (h_new, c_new)

            h0 = jnp.zeros((Bp, H), jnp.float32)
            c0 = jnp.zeros((Bp, H), jnp.float32)
            h_fin, _ = jax.lax.fori_loop(
                0, T, step, (h0, c0),
                unroll=True if T <= 64 else 4)                  # LLO visibility on short loops
            h_finals.append(h_fin)

        # fc(cat(h[-2], h[-1])) == h[-2] @ W[:H] + h[-1] @ W[H:] + b   (no concat / repack)
        h_pen = h_finals[L - 2].astype(matmul_dtype)
        h_last = h_finals[L - 1].astype(matmul_dtype)
        out_ref[...] = (
            jnp.dot(h_pen, fcw_ref[0:H, :], preferred_element_type=jnp.float32)
            + jnp.dot(h_last, fcw_ref[H:2 * H, :], preferred_element_type=jnp.float32)
            + fcb_ref[...]
        )

    return kernel


def rnn_dbpedia_classifier(sample, emb_table, lstm_weights, fc_w, fc_b,
                           *, hidden_dim, matmul_dtype=jnp.float32):
    """Full forward: embedding lookup (glue, plain JAX) + Pallas LSTM/FC kernel.

    sample:       (B, T) int32 token ids
    emb_table:    (V, E) float32
    lstm_weights: list of L tuples (w_ih (4H,in), w_hh (4H,H), b_ih (4H,), b_hh (4H,))
                  in PyTorch gate order i,f,g,o
    fc_w:         (O, 2H) float32 (PyTorch nn.Linear weight)
    fc_b:         (O,)    float32
    """
    B, T = sample.shape
    E = emb_table.shape[1]
    H = hidden_dim
    L = len(lstm_weights)
    O = fc_w.shape[0]
    assert L >= 2, "module uses hidden[-2]; needs num_of_layers >= 2"

    Bp = ((B + 7) // 8) * 8                  # sublane-pad the batch
    Op = ((O + 127) // 128) * 128            # lane-dense FC output

    # Gate reorder i,f,g,o (PyTorch) -> i,f,o,g so activation blocks are contiguous.
    perm = np.concatenate([np.arange(0, H), np.arange(H, 2 * H),
                           np.arange(3 * H, 4 * H), np.arange(2 * H, 3 * H)])

    flat_params = []
    for (w_ih, w_hh, b_ih, b_hh) in lstm_weights:
        wih_t = jnp.asarray(w_ih).T[:, perm].astype(matmul_dtype)        # (in, 4H)
        whh_t = jnp.asarray(w_hh).T[:, perm].astype(matmul_dtype)        # (H, 4H)
        b = ((jnp.asarray(b_ih) + jnp.asarray(b_hh))[perm]
             .reshape(1, -1).astype(jnp.float32))                        # (1, 4H)
        flat_params += [wih_t, whh_t, b]

    fc_w_t = jnp.zeros((2 * H, Op), jnp.float32).at[:, :O].set(jnp.asarray(fc_w).T)
    fc_w_t = fc_w_t.astype(matmul_dtype)                                 # (2H, Op)
    fc_b_p = jnp.zeros((1, Op), jnp.float32).at[0, :O].set(jnp.asarray(fc_b))

    # Embedding lookup + time-major + batch pad + flatten (glue, plain JAX/XLA).
    # TODO(synk): the gather could move in-kernel via scalar-prefetched token ids +
    #             DMA row gather from HBM, overlapping with layer-0 compute.
    embedded = jnp.take(emb_table, sample, axis=0)                       # (B, T, E)
    x_tm = jnp.transpose(embedded, (1, 0, 2))                            # (T, B, E)
    x_tm = jnp.pad(x_tm, ((0, 0), (0, Bp - B), (0, 0)))                  # (T, Bp, E)
    x_flat = x_tm.reshape(T * Bp, E).astype(matmul_dtype)                # (T*Bp, E)

    inputs = [x_flat] + flat_params + [fc_w_t, fc_b_p]
    vmem = pl.BlockSpec(memory_space=pltpu.MemorySpace.VMEM)

    kernel = _make_rnn_classifier_kernel(L, T, Bp, H, matmul_dtype)

    out = pl.pallas_call(
        kernel,
        out_shape=jax.ShapeDtypeStruct((Bp, Op), jnp.float32),
        in_specs=[vmem] * len(inputs),
        out_specs=vmem,
        scratch_shapes=[
            pltpu.VMEM((T * Bp, H), jnp.float32),        # per-layer output sequence
            pltpu.VMEM((T * Bp, 4 * H), jnp.float32),    # hoisted input projection
        ],
    )(*inputs)
    return out[:B, :O]


def _reference_forward(sample, emb_table, lstm_weights, fc_w, fc_b, hidden_dim):
    """Pure-JAX reference with PyTorch weight layout / gate order."""
    H = hidden_dim
    embedded = jnp.take(emb_table, sample, axis=0)      # (B, T, E)
    seq = jnp.transpose(embedded, (1, 0, 2))            # (T, B, E)
    B = seq.shape[1]
    finals = []
    for (w_ih, w_hh, b_ih, b_hh) in lstm_weights:
        h0 = jnp.zeros((B, H), jnp.float32)
        c0 = jnp.zeros((B, H), jnp.float32)

        def step(carry, x_t, w_ih=w_ih, w_hh=w_hh, b_ih=b_ih, b_hh=b_hh):
            h, c = carry
            gates = x_t @ w_ih.T + h @ w_hh.T + b_ih + b_hh
            i = jax.nn.sigmoid(gates[:, 0 * H:1 * H])
            f = jax.nn.sigmoid(gates[:, 1 * H:2 * H])
            g = jnp.tanh(gates[:, 2 * H:3 * H])
            o = jax.nn.sigmoid(gates[:, 3 * H:4 * H])
            c = f * c + i * g
            h = o * jnp.tanh(c)
            return (h, c), h

        (h, c), seq = jax.lax.scan(step, (h0, c0), seq)
        finals.append(h)
    hcat = jnp.concatenate([finals[-2], finals[-1]], axis=1)
    return hcat @ fc_w.T + fc_b


if __name__ == "__main__":
    # Small, deterministic config consistent with the module.
    vocabulary_size = 100
    embedding_dimension = 32   # E
    hidden_dimension = 32      # H  (4H = 128 lanes)
    num_of_layers = 2          # L  (module needs >= 2 for hidden[-2])
    output_dimension = 14      # O  (DBPedia has 14 classes)
    batch = 2                  # B
    seq_len = 8                # T

    key = jax.random.PRNGKey(0)
    keys = jax.random.split(key, 4 + 4 * num_of_layers)

    emb_table = 0.1 * jax.random.normal(
        keys[0], (vocabulary_size, embedding_dimension), jnp.float32)

    lstm_weights = []
    kidx = 1
    for l in range(num_of_layers):
        in_dim = embedding_dimension if l == 0 else hidden_dimension
        w_ih = 0.1 * jax.random.normal(
            keys[kidx], (4 * hidden_dimension, in_dim), jnp.float32)     # torch (4H, in)
        w_hh = 0.1 * jax.random.normal(
            keys[kidx + 1], (4 * hidden_dimension, hidden_dimension), jnp.float32)
        b_ih = 0.1 * jax.random.normal(keys[kidx + 2], (4 * hidden_dimension,), jnp.float32)
        b_hh = 0.1 * jax.random.normal(keys[kidx + 3], (4 * hidden_dimension,), jnp.float32)
        kidx += 4
        lstm_weights.append((w_ih, w_hh, b_ih, b_hh))

    fc_w = 0.1 * jax.random.normal(
        keys[kidx], (output_dimension, 2 * hidden_dimension), jnp.float32)  # torch (O, 2H)
    fc_b = 0.1 * jax.random.normal(keys[kidx + 1], (output_dimension,), jnp.float32)

    sample = jax.random.randint(
        keys[kidx + 2], (batch, seq_len), 0, vocabulary_size, dtype=jnp.int32)

    out = rnn_dbpedia_classifier(
        sample, emb_table, lstm_weights, fc_w, fc_b, hidden_dim=hidden_dimension)
    out = jax.block_until_ready(out)

    ref = _reference_forward(
        sample, emb_table, lstm_weights, fc_w, fc_b, hidden_dimension)
    ref = jax.block_until_ready(ref)

    assert out.shape == (batch, output_dimension)
    np.testing.assert_allclose(np.asarray(out), np.asarray(ref), rtol=1e-4, atol=1e-5)

    print("KERNEL_OK")
</pallas_src>

<mosaic_0001>
module attributes {stable_mosaic.version = 11 : i64} {
  func.func @kernel(%arg0: memref<64x32xf32, #tpu.memory_space<vmem>>, %arg1: memref<32x128xf32, #tpu.memory_space<vmem>>, %arg2: memref<32x128xf32, #tpu.memory_space<vmem>>, %arg3: memref<1x128xf32, #tpu.memory_space<vmem>>, %arg4: memref<32x128xf32, #tpu.memory_space<vmem>>, %arg5: memref<32x128xf32, #tpu.memory_space<vmem>>, %arg6: memref<1x128xf32, #tpu.memory_space<vmem>>, %arg7: memref<64x128xf32, #tpu.memory_space<vmem>>, %arg8: memref<1x128xf32, #tpu.memory_space<vmem>>, %arg9: memref<8x128xf32, #tpu.memory_space<vmem>>, %arg10: memref<64x32xf32, #tpu.memory_space<vmem>>, %arg11: memref<64x128xf32, #tpu.memory_space<vmem>>) attributes {dimension_semantics = [], scalar_prefetch = 0 : i64, scratch_operands = 2 : i64, tpu.core_type = #tpu.core_type<tc>} {
    %c0 = arith.constant 0 : index
    %c0_0 = arith.constant 0 : index
    %0 = vector.load %arg0[%c0, %c0_0] : memref<64x32xf32, #tpu.memory_space<vmem>>, vector<64x32xf32>
    %c0_1 = arith.constant 0 : index
    %c0_2 = arith.constant 0 : index
    %1 = vector.load %arg1[%c0_1, %c0_2] : memref<32x128xf32, #tpu.memory_space<vmem>>, vector<32x128xf32>
    %cst = arith.constant dense<0.000000e+00> : vector<64x128xf32>
    %2 = tpu.matmul %0, %1, %cst {dimension_numbers = #tpu.dot_dimension_numbers<[1], [0], [0], [1], [0, 0, 1, 1], [], []>} : vector<64x32xf32>, vector<32x128xf32>, vector<64x128xf32> -> vector<64x128xf32>
    %c0_3 = arith.constant 0 : index
    %c0_4 = arith.constant 0 : index
    %3 = vector.load %arg3[%c0_3, %c0_4] : memref<1x128xf32, #tpu.memory_space<vmem>>, vector<1x128xf32>
    %4 = vector.broadcast %3 : vector<1x128xf32> to vector<64x128xf32>
    %5 = arith.addf %2, %4 : vector<64x128xf32>
    %c0_5 = arith.constant 0 : index
    %c0_6 = arith.constant 0 : index
    %6 = vector.load %arg11[%c0_5, %c0_6] : memref<64x128xf32, #tpu.memory_space<vmem>>, vector<64x128xf32>
    tpu.vector_store %arg11[%c0_5, %c0_6], %5 {strides = array<i32>} : memref<64x128xf32, #tpu.memory_space<vmem>>, vector<64x128xf32>,
    %c0_7 = arith.constant 0 : index
    %c0_8 = arith.constant 0 : index
    %7 = vector.load %arg2[%c0_7, %c0_8] : memref<32x128xf32, #tpu.memory_space<vmem>>, vector<32x128xf32>
    %cst_9 = arith.constant 0.000000e+00 : f32
    %8 = vector.broadcast %cst_9 : f32 to vector<8x32xf32>
    %cst_10 = arith.constant 0.000000e+00 : f32
    %9 = vector.broadcast %cst_10 : f32 to vector<8x32xf32>
    %c0_i32 = arith.constant 0 : i32
    %c8_i32 = arith.constant 8 : i32
    %10 = arith.muli %c0_i32, %c8_i32 : i32
    %11 = tpu.assume_multiple %10, 8 : i32
    %12 = arith.index_cast %11 : i32 to index
    %c0_11 = arith.constant 0 : index
    %13 = vector.load %arg11[%12, %c0_11] : memref<64x128xf32, #tpu.memory_space<vmem>>, vector<8x128xf32>
    %cst_12 = arith.constant dense<0.000000e+00> : vector<8x128xf32>
    %14 = tpu.matmul %8, %7, %cst_12 {dimension_numbers = #tpu.dot_dimension_numbers<[1], [0], [0], [1], [0, 0, 1, 1], [], []>} : vector<8x32xf32>, vector<32x128xf32>, vector<8x128xf32> -> vector<8x128xf32>
    %15 = arith.addf %13, %14 : vector<8x128xf32>
    %16 = vector.extract_strided_slice %15 {offsets = [0, 0], sizes = [8, 96], strides = [1, 1]} : vector<8x128xf32> to vector<8x96xf32>
    %17 = arith.negf %16 : vector<8x96xf32>
    %18 = math.exp %17 : vector<8x96xf32>
    %cst_13 = arith.constant 1.000000e+00 : f32
    %19 = vector.broadcast %cst_13 : f32 to vector<8x96xf32>
    %20 = arith.addf %19, %18 : vector<8x96xf32>
    %21 = arith.divf %19, %20 : vector<8x96xf32>
    %22 = vector.extract_strided_slice %15 {offsets = [0, 96], sizes = [8, 32], strides = [1, 1]} : vector<8x128xf32> to vector<8x32xf32>
    %23 = math.tanh %22 : vector<8x32xf32>
    %24 = vector.extract_strided_slice %21 {offsets = [0, 0], sizes = [8, 32], strides = [1, 1]} : vector<8x96xf32> to vector<8x32xf32>
    %25 = vector.extract_strided_slice %21 {offsets = [0, 32], sizes = [8, 32], strides = [1, 1]} : vector<8x96xf32> to vector<8x32xf32>
    %26 = vector.extract_strided_slice %21 {offsets = [0, 64], sizes = [8, 32], strides = [1, 1]} : vector<8x96xf32> to vector<8x32xf32>
    %27 = arith.mulf %25, %9 : vector<8x32xf32>
    %28 = arith.mulf %24, %23 : vector<8x32xf32>
    %29 = arith.addf %27, %28 : vector<8x32xf32>
    %30 = math.tanh %29 : vector<8x32xf32>
    %31 = arith.mulf %26, %30 : vector<8x32xf32>
    %32 = arith.index_cast %11 : i32 to index
    %c0_14 = arith.constant 0 : index
    %33 = vector.load %arg10[%32, %c0_14] : memref<64x32xf32, #tpu.memory_space<vmem>>, vector<8x32xf32>
    tpu.vector_store %arg10[%32, %c0_14], %31 {strides = array<i32>} : memref<64x32xf32, #tpu.memory_space<vmem>>, vector<8x32xf32>,
    %c1_i32 = arith.constant 1 : i32
    %c8_i32_15 = arith.constant 8 : i32
    %34 = arith.muli %c1_i32, %c8_i32_15 : i32
    %35 = tpu.assume_multiple %34, 8 : i32
    %36 = arith.index_cast %35 : i32 to index
    %c0_16 = arith.constant 0 : index
    %37 = vector.load %arg11[%36, %c0_16] : memref<64x128xf32, #tpu.memory_space<vmem>>, vector<8x128xf32>
    %cst_17 = arith.constant dense<0.000000e+00> : vector<8x128xf32>
    %38 = tpu.matmul %31, %7, %cst_17 {dimension_numbers = #tpu.dot_dimension_numbers<[1], [0], [0], [1], [0, 0, 1, 1], [], []>} : vector<8x32xf32>, vector<32x128xf32>, vector<8x128xf32> -> vector<8x128xf32>
    %39 = arith.addf %37, %38 : vector<8x128xf32>
    %40 = vector.extract_strided_slice %39 {offsets = [0, 0], sizes = [8, 96], strides = [1, 1]} : vector<8x128xf32> to vector<8x96xf32>
    %41 = arith.negf %40 : vector<8x96xf32>
    %42 = math.exp %41 : vector<8x96xf32>
    %cst_18 = arith.constant 1.000000e+00 : f32
    %43 = vector.broadcast %cst_18 : f32 to vector<8x96xf32>
    %44 = arith.addf %43, %42 : vector<8x96xf32>
    %45 = arith.divf %43, %44 : vector<8x96xf32>
    %46 = vector.extract_strided_slice %39 {offsets = [0, 96], sizes = [8, 32], strides = [1, 1]} : vector<8x128xf32> to vector<8x32xf32>
    %47 = math.tanh %46 : vector<8x32xf32>
    %48 = vector.extract_strided_slice %45 {offsets = [0, 0], sizes = [8, 32], strides = [1, 1]} : vector<8x96xf32> to vector<8x32xf32>
    %49 = vector.extract_strided_slice %45 {offsets = [0, 32], sizes = [8, 32], strides = [1, 1]} : vector<8x96xf32> to vector<8x32xf32>
    %50 = vector.extract_strided_slice %45 {offsets = [0, 64], sizes = [8, 32], strides = [1, 1]} : vector<8x96xf32> to vector<8x32xf32>
    %51 = arith.mulf %49, %29 : vector<8x32xf32>
    %52 = arith.mulf %48, %47 : vector<8x32xf32>
    %53 = arith.addf %51, %52 : vector<8x32xf32>
    %54 = math.tanh %53 : vector<8x32xf32>
    %55 = arith.mulf %50, %54 : vector<8x32xf32>
    %56 = arith.index_cast %35 : i32 to index
    %c0_19 = arith.constant 0 : index
    %57 = vector.load %arg10[%56, %c0_19] : memref<64x32xf32, #tpu.memory_space<vmem>>, vector<8x32xf32>
    tpu.vector_store %arg10[%56, %c0_19], %55 {strides = array<i32>} : memref<64x32xf32, #tpu.memory_space<vmem>>, vector<8x32xf32>,
    %c2_i32 = arith.constant 2 : i32
    %c8_i32_20 = arith.constant 8 : i32
    %58 = arith.muli %c2_i32, %c8_i32_20 : i32
    %59 = tpu.assume_multiple %58, 8 : i32
    %60 = arith.index_cast %59 : i32 to index
    %c0_21 = arith.constant 0 : index
    %61 = vector.load %arg11[%60, %c0_21] : memref<64x128xf32, #tpu.memory_space<vmem>>, vector<8x128xf32>
    %cst_22 = arith.constant dense<0.000000e+00> : vector<8x128xf32>
    %62 = tpu.matmul %55, %7, %cst_22 {dimension_numbers = #tpu.dot_dimension_numbers<[1], [0], [0], [1], [0, 0, 1, 1], [], []>} : vector<8x32xf32>, vector<32x128xf32>, vector<8x128xf32> -> vector<8x128xf32>
    %63 = arith.addf %61, %62 : vector<8x128xf32>
    %64 = vector.extract_strided_slice %63 {offsets = [0, 0], sizes = [8, 96], strides = [1, 1]} : vector<8x128xf32> to vector<8x96xf32>
    %65 = arith.negf %64 : vector<8x96xf32>
    %66 = math.exp %65 : vector<8x96xf32>
    %cst_23 = arith.constant 1.000000e+00 : f32
    %67 = vector.broadcast %cst_23 : f32 to vector<8x96xf32>
    %68 = arith.addf %67, %66 : vector<8x96xf32>
    %69 = arith.divf %67, %68 : vector<8x96xf32>
    %70 = vector.extract_strided_slice %63 {offsets = [0, 96], sizes = [8, 32], strides = [1, 1]} : vector<8x128xf32> to vector<8x32xf32>
    %71 = math.tanh %70 : vector<8x32xf32>
    %72 = vector.extract_strided_slice %69 {offsets = [0, 0], sizes = [8, 32], strides = [1, 1]} : vector<8x96xf32> to vector<8x32xf32>
    %73 = vector.extract_strided_slice %69 {offsets = [0, 32], sizes = [8, 32], strides = [1, 1]} : vector<8x96xf32> to vector<8x32xf32>
    %74 = vector.extract_strided_slice %69 {offsets = [0, 64], sizes = [8, 32], strides = [1, 1]} : vector<8x96xf32> to vector<8x32xf32>
    %75 = arith.mulf %73, %53 : vector<8x32xf32>
    %76 = arith.mulf %72, %71 : vector<8x32xf32>
    %77 = arith.addf %75, %76 : vector<8x32xf32>
    %78 = math.tanh %77 : vector<8x32xf32>
    %79 = arith.mulf %74, %78 : vector<8x32xf32>
    %80 = arith.index_cast %59 : i32 to index
    %c0_24 = arith.constant 0 : index
    %81 = vector.load %arg10[%80, %c0_24] : memref<64x32xf32, #tpu.memory_space<vmem>>, vector<8x32xf32>
    tpu.vector_store %arg10[%80, %c0_24], %79 {strides = array<i32>} : memref<64x32xf32, #tpu.memory_space<vmem>>, vector<8x32xf32>,
    %c3_i32 = arith.constant 3 : i32
    %c8_i32_25 = arith.constant 8 : i32
    %82 = arith.muli %c3_i32, %c8_i32_25 : i32
    %83 = tpu.assume_multiple %82, 8 : i32
    %84 = arith.index_cast %83 : i32 to index
    %c0_26 = arith.constant 0 : index
    %85 = vector.load %arg11[%84, %c0_26] : memref<64x128xf32, #tpu.memory_space<vmem>>, vector<8x128xf32>
    %cst_27 = arith.constant dense<0.000000e+00> : vector<8x128xf32>
    %86 = tpu.matmul %79, %7, %cst_27 {dimension_numbers = #tpu.dot_dimension_numbers<[1], [0], [0], [1], [0, 0, 1, 1], [], []>} : vector<8x32xf32>, vector<32x128xf32>, vector<8x128xf32> -> vector<8x128xf32>
    %87 = arith.addf %85, %86 : vector<8x128xf32>
    %88 = vector.extract_strided_slice %87 {offsets = [0, 0], sizes = [8, 96], strides = [1, 1]} : vector<8x128xf32> to vector<8x96xf32>
    %89 = arith.negf %88 : vector<8x96xf32>
    %90 = math.exp %89 : vector<8x96xf32>
    %cst_28 = arith.constant 1.000000e+00 : f32
    %91 = vector.broadcast %cst_28 : f32 to vector<8x96xf32>
    %92 = arith.addf %91, %90 : vector<8x96xf32>
    %93 = arith.divf %91, %92 : vector<8x96xf32>
    %94 = vector.extract_strided_slice %87 {offsets = [0, 96], sizes = [8, 32], strides = [1, 1]} : vector<8x128xf32> to vector<8x32xf32>
    %95 = math.tanh %94 : vector<8x32xf32>
    %96 = vector.extract_strided_slice %93 {offsets = [0, 0], sizes = [8, 32], strides = [1, 1]} : vector<8x96xf32> to vector<8x32xf32>
    %97 = vector.extract_strided_slice %93 {offsets = [0, 32], sizes = [8, 32], strides = [1, 1]} : vector<8x96xf32> to vector<8x32xf32>
    %98 = vector.extract_strided_slice %93 {offsets = [0, 64], sizes = [8, 32], strides = [1, 1]} : vector<8x96xf32> to vector<8x32xf32>
    %99 = arith.mulf %97, %77 : vector<8x32xf32>
    %100 = arith.mulf %96, %95 : vector<8x32xf32>
    %101 = arith.addf %99, %100 : vector<8x32xf32>
    %102 = math.tanh %101 : vector<8x32xf32>
    %103 = arith.mulf %98, %102 : vector<8x32xf32>
    %104 = arith.index_cast %83 : i32 to index
    %c0_29 = arith.constant 0 : index
    %105 = vector.load %arg10[%104, %c0_29] : memref<64x32xf32, #tpu.memory_space<vmem>>, vector<8x32xf32>
    tpu.vector_store %arg10[%104, %c0_29], %103 {strides = array<i32>} : memref<64x32xf32, #tpu.memory_space<vmem>>, vector<8x32xf32>,
    %c4_i32 = arith.constant 4 : i32
    %c8_i32_30 = arith.constant 8 : i32
    %106 = arith.muli %c4_i32, %c8_i32_30 : i32
    %107 = tpu.assume_multiple %106, 8 : i32
    %108 = arith.index_cast %107 : i32 to index
    %c0_31 = arith.constant 0 : index
    %109 = vector.load %arg11[%108, %c0_31] : memref<64x128xf32, #tpu.memory_space<vmem>>, vector<8x128xf32>
    %cst_32 = arith.constant dense<0.000000e+00> : vector<8x128xf32>
    %110 = tpu.matmul %103, %7, %cst_32 {dimension_numbers = #tpu.dot_dimension_numbers<[1], [0], [0], [1], [0, 0, 1, 1], [], []>} : vector<8x32xf32>, vector<32x128xf32>, vector<8x128xf32> -> vector<8x128xf32>
    %111 = arith.addf %109, %110 : vector<8x128xf32>
    %112 = vector.extract_strided_slice %111 {offsets = [0, 0], sizes = [8, 96], strides = [1, 1]} : vector<8x128xf32> to vector<8x96xf32>
    %113 = arith.negf %112 : vector<8x96xf32>
    %114 = math.exp %113 : vector<8x96xf32>
    %cst_33 = arith.constant 1.000000e+00 : f32
    %115 = vector.broadcast %cst_33 : f32 to vector<8x96xf32>
    %116 = arith.addf %115, %114 : vector<8x96xf32>
    %117 = arith.divf %115, %116 : vector<8x96xf32>
    %118 = vector.extract_strided_slice %111 {offsets = [0, 96], sizes = [8, 32], strides = [1, 1]} : vector<8x128xf32> to vector<8x32xf32>
    %119 = math.tanh %118 : vector<8x32xf32>
    %120 = vector.extract_strided_slice %117 {offsets = [0, 0], sizes = [8, 32], strides = [1, 1]} : vector<8x96xf32> to vector<8x32xf32>
    %121 = vector.extract_strided_slice %117 {offsets = [0, 32], sizes = [8, 32], strides = [1, 1]} : vector<8x96xf32> to vector<8x32xf32>
    %122 = vector.extract_strided_slice %117 {offsets = [0, 64], sizes = [8, 32], strides = [1, 1]} : vector<8x96xf32> to vector<8x32xf32>
    %123 = arith.mulf %121, %101 : vector<8x32xf32>
    %124 = arith.mulf %120, %119 : vector<8x32xf32>
    %125 = arith.addf %123, %124 : vector<8x32xf32>
    %126 = math.tanh %125 : vector<8x32xf32>
    %127 = arith.mulf %122, %126 : vector<8x32xf32>
    %128 = arith.index_cast %107 : i32 to index
    %c0_34 = arith.constant 0 : index
    %129 = vector.load %arg10[%128, %c0_34] : memref<64x32xf32, #tpu.memory_space<vmem>>, vector<8x32xf32>
    tpu.vector_store %arg10[%128, %c0_34], %127 {strides = array<i32>} : memref<64x32xf32, #tpu.memory_space<vmem>>, vector<8x32xf32>,
    %c5_i32 = arith.constant 5 : i32
    %c8_i32_35 = arith.constant 8 : i32
    %130 = arith.muli %c5_i32, %c8_i32_35 : i32
    %131 = tpu.assume_multiple %130, 8 : i32
    %132 = arith.index_cast %131 : i32 to index
    %c0_36 = arith.constant 0 : index
    %133 = vector.load %arg11[%132, %c0_36] : memref<64x128xf32, #tpu.memory_space<vmem>>, vector<8x128xf32>
    %cst_37 = arith.constant dense<0.000000e+00> : vector<8x128xf32>
    %134 = tpu.matmul %127, %7, %cst_37 {dimension_numbers = #tpu.dot_dimension_numbers<[1], [0], [0], [1], [0, 0, 1, 1], [], []>} : vector<8x32xf32>, vector<32x128xf32>, vector<8x128xf32> -> vector<8x128xf32>
    %135 = arith.addf %133, %134 : vector<8x128xf32>
    %136 = vector.extract_strided_slice %135 {offsets = [0, 0], sizes = [8, 96], strides = [1, 1]} : vector<8x128xf32> to vector<8x96xf32>
    %137 = arith.negf %136 : vector<8x96xf32>
    %138 = math.exp %137 : vector<8x96xf32>
    %cst_38 = arith.constant 1.000000e+00 : f32
    %139 = vector.broadcast %cst_38 : f32 to vector<8x96xf32>
    %140 = arith.addf %139, %138 : vector<8x96xf32>
    %141 = arith.divf %139, %140 : vector<8x96xf32>
    %142 = vector.extract_strided_slice %135 {offsets = [0, 96], sizes = [8, 32], strides = [1, 1]} : vector<8x128xf32> to vector<8x32xf32>
    %143 = math.tanh %142 : vector<8x32xf32>
    %144 = vector.extract_strided_slice %141 {offsets = [0, 0], sizes = [8, 32], strides = [1, 1]} : vector<8x96xf32> to vector<8x32xf32>
    %145 = vector.extract_strided_slice %141 {offsets = [0, 32], sizes = [8, 32], strides = [1, 1]} : vector<8x96xf32> to vector<8x32xf32>
    %146 = vector.extract_strided_slice %141 {offsets = [0, 64], sizes = [8, 32], strides = [1, 1]} : vector<8x96xf32> to vector<8x32xf32>
    %147 = arith.mulf %145, %125 : vector<8x32xf32>
    %148 = arith.mulf %144, %143 : vector<8x32xf32>
    %149 = arith.addf %147, %148 : vector<8x32xf32>
    %150 = math.tanh %149 : vector<8x32xf32>
    %151 = arith.mulf %146, %150 : vector<8x32xf32>
    %152 = arith.index_cast %131 : i32 to index
    %c0_39 = arith.constant 0 : index
    %153 = vector.load %arg10[%152, %c0_39] : memref<64x32xf32, #tpu.memory_space<vmem>>, vector<8x32xf32>
    tpu.vector_store %arg10[%152, %c0_39], %151 {strides = array<i32>} : memref<64x32xf32, #tpu.memory_space<vmem>>, vector<8x32xf32>,
    %c6_i32 = arith.constant 6 : i32
    %c8_i32_40 = arith.constant 8 : i32
    %154 = arith.muli %c6_i32, %c8_i32_40 : i32
    %155 = tpu.assume_multiple %154, 8 : i32
    %156 = arith.index_cast %155 : i32 to index
    %c0_41 = arith.constant 0 : index
    %157 = vector.load %arg11[%156, %c0_41] : memref<64x128xf32, #tpu.memory_space<vmem>>, vector<8x128xf32>
    %cst_42 = arith.constant dense<0.000000e+00> : vector<8x128xf32>
    %158 = tpu.matmul %151, %7, %cst_42 {dimension_numbers = #tpu.dot_dimension_numbers<[1], [0], [0], [1], [0, 0, 1, 1], [], []>} : vector<8x32xf32>, vector<32x128xf32>, vector<8x128xf32> -> vector<8x128xf32>
    %159 = arith.addf %157, %158 : vector<8x128xf32>
    %160 = vector.extract_strided_slice %159 {offsets = [0, 0], sizes = [8, 96], strides = [1, 1]} : vector<8x128xf32> to vector<8x96xf32>
    %161 = arith.negf %160 : vector<8x96xf32>
    %162 = math.exp %161 : vector<8x96xf32>
    %cst_43 = arith.constant 1.000000e+00 : f32
    %163 = vector.broadcast %cst_43 : f32 to vector<8x96xf32>
    %164 = arith.addf %163, %162 : vector<8x96xf32>
    %165 = arith.divf %163, %164 : vector<8x96xf32>
    %166 = vector.extract_strided_slice %159 {offsets = [0, 96], sizes = [8, 32], strides = [1, 1]} : vector<8x128xf32> to vector<8x32xf32>
    %167 = math.tanh %166 : vector<8x32xf32>
    %168 = vector.extract_strided_slice %165 {offsets = [0, 0], sizes = [8, 32], strides = [1, 1]} : vector<8x96xf32> to vector<8x32xf32>
    %169 = vector.extract_strided_slice %165 {offsets = [0, 32], sizes = [8, 32], strides = [1, 1]} : vector<8x96xf32> to vector<8x32xf32>
    %170 = vector.extract_strided_slice %165 {offsets = [0, 64], sizes = [8, 32], strides = [1, 1]} : vector<8x96xf32> to vector<8x32xf32>
    %171 = arith.mulf %169, %149 : vector<8x32xf32>
    %172 = arith.mulf %168, %167 : vector<8x32xf32>
    %173 = arith.addf %171, %172 : vector<8x32xf32>
    %174 = math.tanh %173 : vector<8x32xf32>
    %175 = arith.mulf %170, %174 : vector<8x32xf32>
    %176 = arith.index_cast %155 : i32 to index
    %c0_44 = arith.constant 0 : index
    %177 = vector.load %arg10[%176, %c0_44] : memref<64x32xf32, #tpu.memory_space<vmem>>, vector<8x32xf32>
    tpu.vector_store %arg10[%176, %c0_44], %175 {strides = array<i32>} : memref<64x32xf32, #tpu.memory_space<vmem>>, vector<8x32xf32>,
    %c7_i32 = arith.constant 7 : i32
    %c8_i32_45 = arith.constant 8 : i32
    %178 = arith.muli %c7_i32, %c8_i32_45 : i32
    %179 = tpu.assume_multiple %178, 8 : i32
    %180 = arith.index_cast %179 : i32 to index
    %c0_46 = arith.constant 0 : index
    %181 = vector.load %arg11[%180, %c0_46] : memref<64x128xf32, #tpu.memory_space<vmem>>, vector<8x128xf32>
    %cst_47 = arith.constant dense<0.000000e+00> : vector<8x128xf32>
    %182 = tpu.matmul %175, %7, %cst_47 {dimension_numbers = #tpu.dot_dimension_numbers<[1], [0], [0], [1], [0, 0, 1, 1], [], []>} : vector<8x32xf32>, vector<32x128xf32>, vector<8x128xf32> -> vector<8x128xf32>
    %183 = arith.addf %181, %182 : vector<8x128xf32>
    %184 = vector.extract_strided_slice %183 {offsets = [0, 0], sizes = [8, 96], strides = [1, 1]} : vector<8x128xf32> to vector<8x96xf32>
    %185 = arith.negf %184 : vector<8x96xf32>
    %186 = math.exp %185 : vector<8x96xf32>
    %cst_48 = arith.constant 1.000000e+00 : f32
    %187 = vector.broadcast %cst_48 : f32 to vector<8x96xf32>
    %188 = arith.addf %187, %186 : vector<8x96xf32>
    %189 = arith.divf %187, %188 : vector<8x96xf32>
    %190 = vector.extract_strided_slice %183 {offsets = [0, 96], sizes = [8, 32], strides = [1, 1]} : vector<8x128xf32> to vector<8x32xf32>
    %191 = math.tanh %190 : vector<8x32xf32>
    %192 = vector.extract_strided_slice %189 {offsets = [0, 0], sizes = [8, 32], strides = [1, 1]} : vector<8x96xf32> to vector<8x32xf32>
    %193 = vector.extract_strided_slice %189 {offsets = [0, 32], sizes = [8, 32], strides = [1, 1]} : vector<8x96xf32> to vector<8x32xf32>
    %194 = vector.extract_strided_slice %189 {offsets = [0, 64], sizes = [8, 32], strides = [1, 1]} : vector<8x96xf32> to vector<8x32xf32>
    %195 = arith.mulf %193, %173 : vector<8x32xf32>
    %196 = arith.mulf %192, %191 : vector<8x32xf32>
    %197 = arith.addf %195, %196 : vector<8x32xf32>
    %198 = math.tanh %197 : vector<8x32xf32>
    %199 = arith.mulf %194, %198 : vector<8x32xf32>
    %200 = arith.index_cast %179 : i32 to index
    %c0_49 = arith.constant 0 : index
    %201 = vector.load %arg10[%200, %c0_49] : memref<64x32xf32, #tpu.memory_space<vmem>>, vector<8x32xf32>
    tpu.vector_store %arg10[%200, %c0_49], %199 {strides = array<i32>} : memref<64x32xf32, #tpu.memory_space<vmem>>, vector<8x32xf32>,
    %c8_i32_50 = arith.constant 8 : i32
    %c0_51 = arith.constant 0 : index
    %c0_52 = arith.constant 0 : index
    %202 = vector.load %arg10[%c0_51, %c0_52] : memref<64x32xf32, #tpu.memory_space<vmem>>, vector<64x32xf32>
    %c0_53 = arith.constant 0 : index
    %c0_54 = arith.constant 0 : index
    %203 = vector.load %arg4[%c0_53, %c0_54] : memref<32x128xf32, #tpu.memory_space<vmem>>, vector<32x128xf32>
    %cst_55 = arith.constant dense<0.000000e+00> : vector<64x128xf32>
    %204 = tpu.matmul %202, %203, %cst_55 {dimension_numbers = #tpu.dot_dimension_numbers<[1], [0], [0], [1], [0, 0, 1, 1], [], []>} : vector<64x32xf32>, vector<32x128xf32>, vector<64x128xf32> -> vector<64x128xf32>
    %c0_56 = arith.constant 0 : index
    %c0_57 = arith.constant 0 : index
    %205 = vector.load %arg6[%c0_56, %c0_57] : memref<1x128xf32, #tpu.memory_space<vmem>>, vector<1x128xf32>
    %206 = vector.broadcast %205 : vector<1x128xf32> to vector<64x128xf32>
    %207 = arith.addf %204, %206 : vector<64x128xf32>
    %c0_58 = arith.constant 0 : index
    %c0_59 = arith.constant 0 : index
    %208 = vector.load %arg11[%c0_58, %c0_59] : memref<64x128xf32, #tpu.memory_space<vmem>>, vector<64x128xf32>
    tpu.vector_store %arg11[%c0_58, %c0_59], %207 {strides = array<i32>} : memref<64x128xf32, #tpu.memory_space<vmem>>, vector<64x128xf32>,
    %c0_60 = arith.constant 0 : index
    %c0_61 = arith.constant 0 : index
    %209 = vector.load %arg5[%c0_60, %c0_61] : memref<32x128xf32, #tpu.memory_space<vmem>>, vector<32x128xf32>
    %cst_62 = arith.constant 0.000000e+00 : f32
    %210 = vector.broadcast %cst_62 : f32 to vector<8x32xf32>
    %cst_63 = arith.constant 0.000000e+00 : f32
    %211 = vector.broadcast %cst_63 : f32 to vector<8x32xf32>
    %c0_i32_64 = arith.constant 0 : i32
    %c8_i32_65 = arith.constant 8 : i32
    %212 = arith.muli %c0_i32_64, %c8_i32_65 : i32
    %213 = tpu.assume_multiple %212, 8 : i32
    %214 = arith.index_cast %213 : i32 to index
    %c0_66 = arith.constant 0 : index
    %215 = vector.load %arg11[%214, %c0_66] : memref<64x128xf32, #tpu.memory_space<vmem>>, vector<8x128xf32>
    %cst_67 = arith.constant dense<0.000000e+00> : vector<8x128xf32>
    %216 = tpu.matmul %210, %209, %cst_67 {dimension_numbers = #tpu.dot_dimension_numbers<[1], [0], [0], [1], [0, 0, 1, 1], [], []>} : vector<8x32xf32>, vector<32x128xf32>, vector<8x128xf32> -> vector<8x128xf32>
    %217 = arith.addf %215, %216 : vector<8x128xf32>
    %218 = vector.extract_strided_slice %217 {offsets = [0, 0], sizes = [8, 96], strides = [1, 1]} : vector<8x128xf32> to vector<8x96xf32>
    %219 = arith.negf %218 : vector<8x96xf32>
    %220 = math.exp %219 : vector<8x96xf32>
    %cst_68 = arith.constant 1.000000e+00 : f32
    %221 = vector.broadcast %cst_68 : f32 to vector<8x96xf32>
    %222 = arith.addf %221, %220 : vector<8x96xf32>
    %223 = arith.divf %221, %222 : vector<8x96xf32>
    %224 = vector.extract_strided_slice %217 {offsets = [0, 96], sizes = [8, 32], strides = [1, 1]} : vector<8x128xf32> to vector<8x32xf32>
    %225 = math.tanh %224 : vector<8x32xf32>
    %226 = vector.extract_strided_slice %223 {offsets = [0, 0], sizes = [8, 32], strides = [1, 1]} : vector<8x96xf32> to vector<8x32xf32>
    %227 = vector.extract_strided_slice %223 {offsets = [0, 32], sizes = [8, 32], strides = [1, 1]} : vector<8x96xf32> to vector<8x32xf32>
    %228 = vector.extract_strided_slice %223 {offsets = [0, 64], sizes = [8, 32], strides = [1, 1]} : vector<8x96xf32> to vector<8x32xf32>
    %229 = arith.mulf %227, %211 : vector<8x32xf32>
    %230 = arith.mulf %226, %225 : vector<8x32xf32>
    %231 = arith.addf %229, %230 : vector<8x32xf32>
    %232 = math.tanh %231 : vector<8x32xf32>
    %233 = arith.mulf %228, %232 : vector<8x32xf32>
    %c1_i32_69 = arith.constant 1 : i32
    %c8_i32_70 = arith.constant 8 : i32
    %234 = arith.muli %c1_i32_69, %c8_i32_70 : i32
    %235 = tpu.assume_multiple %234, 8 : i32
    %236 = arith.index_cast %235 : i32 to index
    %c0_71 = arith.constant 0 : index
    %237 = vector.load %arg11[%236, %c0_71] : memref<64x128xf32, #tpu.memory_space<vmem>>, vector<8x128xf32>
    %cst_72 = arith.constant dense<0.000000e+00> : vector<8x128xf32>
    %238 = tpu.matmul %233, %209, %cst_72 {dimension_numbers = #tpu.dot_dimension_numbers<[1], [0], [0], [1], [0, 0, 1, 1], [], []>} : vector<8x32xf32>, vector<32x128xf32>, vector<8x128xf32> -> vector<8x128xf32>
    %239 = arith.addf %237, %238 : vector<8x128xf32>
    %240 = vector.extract_strided_slice %239 {offsets = [0, 0], sizes = [8, 96], strides = [1, 1]} : vector<8x128xf32> to vector<8x96xf32>
    %241 = arith.negf %240 : vector<8x96xf32>
    %242 = math.exp %241 : vector<8x96xf32>
    %cst_73 = arith.constant 1.000000e+00 : f32
    %243 = vector.broadcast %cst_73 : f32 to vector<8x96xf32>
    %244 = arith.addf %243, %242 : vector<8x96xf32>
    %245 = arith.divf %243, %244 : vector<8x96xf32>
    %246 = vector.extract_strided_slice %239 {offsets = [0, 96], sizes = [8, 32], strides = [1, 1]} : vector<8x128xf32> to vector<8x32xf32>
    %247 = math.tanh %246 : vector<8x32xf32>
    %248 = vector.extract_strided_slice %245 {offsets = [0, 0], sizes = [8, 32], strides = [1, 1]} : vector<8x96xf32> to vector<8x32xf32>
    %249 = vector.extract_strided_slice %245 {offsets = [0, 32], sizes = [8, 32], strides = [1, 1]} : vector<8x96xf32> to vector<8x32xf32>
    %250 = vector.extract_strided_slice %245 {offsets = [0, 64], sizes = [8, 32], strides = [1, 1]} : vector<8x96xf32> to vector<8x32xf32>
    %251 = arith.mulf %249, %231 : vector<8x32xf32>
    %252 = arith.mulf %248, %247 : vector<8x32xf32>
    %253 = arith.addf %251, %252 : vector<8x32xf32>
    %254 = math.tanh %253 : vector<8x32xf32>
    %255 = arith.mulf %250, %254 : vector<8x32xf32>
    %c2_i32_74 = arith.constant 2 : i32
    %c8_i32_75 = arith.constant 8 : i32
    %256 = arith.muli %c2_i32_74, %c8_i32_75 : i32
    %257 = tpu.assume_multiple %256, 8 : i32
    %258 = arith.index_cast %257 : i32 to index
    %c0_76 = arith.constant 0 : index
    %259 = vector.load %arg11[%258, %c0_76] : memref<64x128xf32, #tpu.memory_space<vmem>>, vector<8x128xf32>
    %cst_77 = arith.constant dense<0.000000e+00> : vector<8x128xf32>
    %260 = tpu.matmul %255, %209, %cst_77 {dimension_numbers = #tpu.dot_dimension_numbers<[1], [0], [0], [1], [0, 0, 1, 1], [], []>} : vector<8x32xf32>, vector<32x128xf32>, vector<8x128xf32> -> vector<8x128xf32>
    %261 = arith.addf %259, %260 : vector<8x128xf32>
    %262 = vector.extract_strided_slice %261 {offsets = [0, 0], sizes = [8, 96], strides = [1, 1]} : vector<8x128xf32> to vector<8x96xf32>
    %263 = arith.negf %262 : vector<8x96xf32>
    %264 = math.exp %263 : vector<8x96xf32>
    %cst_78 = arith.constant 1.000000e+00 : f32
    %265 = vector.broadcast %cst_78 : f32 to vector<8x96xf32>
    %266 = arith.addf %265, %264 : vector<8x96xf32>
    %267 = arith.divf %265, %266 : vector<8x96xf32>
    %268 = vector.extract_strided_slice %261 {offsets = [0, 96], sizes = [8, 32], strides = [1, 1]} : vector<8x128xf32> to vector<8x32xf32>
    %269 = math.tanh %268 : vector<8x32xf32>
    %270 = vector.extract_strided_slice %267 {offsets = [0, 0], sizes = [8, 32], strides = [1, 1]} : vector<8x96xf32> to vector<8x32xf32>
    %271 = vector.extract_strided_slice %267 {offsets = [0, 32], sizes = [8, 32], strides = [1, 1]} : vector<8x96xf32> to vector<8x32xf32>
    %272 = vector.extract_strided_slice %267 {offsets = [0, 64], sizes = [8, 32], strides = [1, 1]} : vector<8x96xf32> to vector<8x32xf32>
    %273 = arith.mulf %271, %253 : vector<8x32xf32>
    %274 = arith.mulf %270, %269 : vector<8x32xf32>
    %275 = arith.addf %273, %274 : vector<8x32xf32>
    %276 = math.tanh %275 : vector<8x32xf32>
    %277 = arith.mulf %272, %276 : vector<8x32xf32>
    %c3_i32_79 = arith.constant 3 : i32
    %c8_i32_80 = arith.constant 8 : i32
    %278 = arith.muli %c3_i32_79, %c8_i32_80 : i32
    %279 = tpu.assume_multiple %278, 8 : i32
    %280 = arith.index_cast %279 : i32 to index
    %c0_81 = arith.constant 0 : index
    %281 = vector.load %arg11[%280, %c0_81] : memref<64x128xf32, #tpu.memory_space<vmem>>, vector<8x128xf32>
    %cst_82 = arith.constant dense<0.000000e+00> : vector<8x128xf32>
    %282 = tpu.matmul %277, %209, %cst_82 {dimension_numbers = #tpu.dot_dimension_numbers<[1], [0], [0], [1], [0, 0, 1, 1], [], []>} : vector<8x32xf32>, vector<32x128xf32>, vector<8x128xf32> -> vector<8x128xf32>
    %283 = arith.addf %281, %282 : vector<8x128xf32>
    %284 = vector.extract_strided_slice %283 {offsets = [0, 0], sizes = [8, 96], strides = [1, 1]} : vector<8x128xf32> to vector<8x96xf32>
    %285 = arith.negf %284 : vector<8x96xf32>
    %286 = math.exp %285 : vector<8x96xf32>
    %cst_83 = arith.constant 1.000000e+00 : f32
    %287 = vector.broadcast %cst_83 : f32 to vector<8x96xf32>
    %288 = arith.addf %287, %286 : vector<8x96xf32>
    %289 = arith.divf %287, %288 : vector<8x96xf32>
    %290 = vector.extract_strided_slice %283 {offsets = [0, 96], sizes = [8, 32], strides = [1, 1]} : vector<8x128xf32> to vector<8x32xf32>
    %291 = math.tanh %290 : vector<8x32xf32>
    %292 = vector.extract_strided_slice %289 {offsets = [0, 0], sizes = [8, 32], strides = [1, 1]} : vector<8x96xf32> to vector<8x32xf32>
    %293 = vector.extract_strided_slice %289 {offsets = [0, 32], sizes = [8, 32], strides = [1, 1]} : vector<8x96xf32> to vector<8x32xf32>
    %294 = vector.extract_strided_slice %289 {offsets = [0, 64], sizes = [8, 32], strides = [1, 1]} : vector<8x96xf32> to vector<8x32xf32>
    %295 = arith.mulf %293, %275 : vector<8x32xf32>
    %296 = arith.mulf %292, %291 : vector<8x32xf32>
    %297 = arith.addf %295, %296 : vector<8x32xf32>
    %298 = math.tanh %297 : vector<8x32xf32>
    %299 = arith.mulf %294, %298 : vector<8x32xf32>
    %c4_i32_84 = arith.constant 4 : i32
    %c8_i32_85 = arith.constant 8 : i32
    %300 = arith.muli %c4_i32_84, %c8_i32_85 : i32
    %301 = tpu.assume_multiple %300, 8 : i32
    %302 = arith.index_cast %301 : i32 to index
    %c0_86 = arith.constant 0 : index
    %303 = vector.load %arg11[%302, %c0_86] : memref<64x128xf32, #tpu.memory_space<vmem>>, vector<8x128xf32>
    %cst_87 = arith.constant dense<0.000000e+00> : vector<8x128xf32>
    %304 = tpu.matmul %299, %209, %cst_87 {dimension_numbers = #tpu.dot_dimension_numbers<[1], [0], [0], [1], [0, 0, 1, 1], [], []>} : vector<8x32xf32>, vector<32x128xf32>, vector<8x128xf32> -> vector<8x128xf32>
    %305 = arith.addf %303, %304 : vector<8x128xf32>
    %306 = vector.extract_strided_slice %305 {offsets = [0, 0], sizes = [8, 96], strides = [1, 1]} : vector<8x128xf32> to vector<8x96xf32>
    %307 = arith.negf %306 : vector<8x96xf32>
    %308 = math.exp %307 : vector<8x96xf32>
    %cst_88 = arith.constant 1.000000e+00 : f32
    %309 = vector.broadcast %cst_88 : f32 to vector<8x96xf32>
    %310 = arith.addf %309, %308 : vector<8x96xf32>
    %311 = arith.divf %309, %310 : vector<8x96xf32>
    %312 = vector.extract_strided_slice %305 {offsets = [0, 96], sizes = [8, 32], strides = [1, 1]} : vector<8x128xf32> to vector<8x32xf32>
    %313 = math.tanh %312 : vector<8x32xf32>
    %314 = vector.extract_strided_slice %311 {offsets = [0, 0], sizes = [8, 32], strides = [1, 1]} : vector<8x96xf32> to vector<8x32xf32>
    %315 = vector.extract_strided_slice %311 {offsets = [0, 32], sizes = [8, 32], strides = [1, 1]} : vector<8x96xf32> to vector<8x32xf32>
    %316 = vector.extract_strided_slice %311 {offsets = [0, 64], sizes = [8, 32], strides = [1, 1]} : vector<8x96xf32> to vector<8x32xf32>
    %317 = arith.mulf %315, %297 : vector<8x32xf32>
    %318 = arith.mulf %314, %313 : vector<8x32xf32>
    %319 = arith.addf %317, %318 : vector<8x32xf32>
    %320 = math.tanh %319 : vector<8x32xf32>
    %321 = arith.mulf %316, %320 : vector<8x32xf32>
    %c5_i32_89 = arith.constant 5 : i32
    %c8_i32_90 = arith.constant 8 : i32
    %322 = arith.muli %c5_i32_89, %c8_i32_90 : i32
    %323 = tpu.assume_multiple %322, 8 : i32
    %324 = arith.index_cast %323 : i32 to index
    %c0_91 = arith.constant 0 : index
    %325 = vector.load %arg11[%324, %c0_91] : memref<64x128xf32, #tpu.memory_space<vmem>>, vector<8x128xf32>
    %cst_92 = arith.constant dense<0.000000e+00> : vector<8x128xf32>
    %326 = tpu.matmul %321, %209, %cst_92 {dimension_numbers = #tpu.dot_dimension_numbers<[1], [0], [0], [1], [0, 0, 1, 1], [], []>} : vector<8x32xf32>, vector<32x128xf32>, vector<8x128xf32> -> vector<8x128xf32>
    %327 = arith.addf %325, %326 : vector<8x128xf32>
    %328 = vector.extract_strided_slice %327 {offsets = [0, 0], sizes = [8, 96], strides = [1, 1]} : vector<8x128xf32> to vector<8x96xf32>
    %329 = arith.negf %328 : vector<8x96xf32>
    %330 = math.exp %329 : vector<8x96xf32>
    %cst_93 = arith.constant 1.000000e+00 : f32
    %331 = vector.broadcast %cst_93 : f32 to vector<8x96xf32>
    %332 = arith.addf %331, %330 : vector<8x96xf32>
    %333 = arith.divf %331, %332 : vector<8x96xf32>
    %334 = vector.extract_strided_slice %327 {offsets = [0, 96], sizes = [8, 32], strides = [1, 1]} : vector<8x128xf32> to vector<8x32xf32>
    %335 = math.tanh %334 : vector<8x32xf32>
    %336 = vector.extract_strided_slice %333 {offsets = [0, 0], sizes = [8, 32], strides = [1, 1]} : vector<8x96xf32> to vector<8x32xf32>
    %337 = vector.extract_strided_slice %333 {offsets = [0, 32], sizes = [8, 32], strides = [1, 1]} : vector<8x96xf32> to vector<8x32xf32>
    %338 = vector.extract_strided_slice %333 {offsets = [0, 64], sizes = [8, 32], strides = [1, 1]} : vector<8x96xf32> to vector<8x32xf32>
    %339 = arith.mulf %337, %319 : vector<8x32xf32>
    %340 = arith.mulf %336, %335 : vector<8x32xf32>
    %341 = arith.addf %339, %340 : vector<8x32xf32>
    %342 = math.tanh %341 : vector<8x32xf32>
    %343 = arith.mulf %338, %342 : vector<8x32xf32>
    %c6_i32_94 = arith.constant 6 : i32
    %c8_i32_95 = arith.constant 8 : i32
    %344 = arith.muli %c6_i32_94, %c8_i32_95 : i32
    %345 = tpu.assume_multiple %344, 8 : i32
    %346 = arith.index_cast %345 : i32 to index
    %c0_96 = arith.constant 0 : index
    %347 = vector.load %arg11[%346, %c0_96] : memref<64x128xf32, #tpu.memory_space<vmem>>, vector<8x128xf32>
    %cst_97 = arith.constant dense<0.000000e+00> : vector<8x128xf32>
    %348 = tpu.matmul %343, %209, %cst_97 {dimension_numbers = #tpu.dot_dimension_numbers<[1], [0], [0], [1], [0, 0, 1, 1], [], []>} : vector<8x32xf32>, vector<32x128xf32>, vector<8x128xf32> -> vector<8x128xf32>
    %349 = arith.addf %347, %348 : vector<8x128xf32>
    %350 = vector.extract_strided_slice %349 {offsets = [0, 0], sizes = [8, 96], strides = [1, 1]} : vector<8x128xf32> to vector<8x96xf32>
    %351 = arith.negf %350 : vector<8x96xf32>
    %352 = math.exp %351 : vector<8x96xf32>
    %cst_98 = arith.constant 1.000000e+00 : f32
    %353 = vector.broadcast %cst_98 : f32 to vector<8x96xf32>
    %354 = arith.addf %353, %352 : vector<8x96xf32>
    %355 = arith.divf %353, %354 : vector<8x96xf32>
    %356 = vector.extract_strided_slice %349 {offsets = [0, 96], sizes = [8, 32], strides = [1, 1]} : vector<8x128xf32> to vector<8x32xf32>
    %357 = math.tanh %356 : vector<8x32xf32>
    %358 = vector.extract_strided_slice %355 {offsets = [0, 0], sizes = [8, 32], strides = [1, 1]} : vector<8x96xf32> to vector<8x32xf32>
    %359 = vector.extract_strided_slice %355 {offsets = [0, 32], sizes = [8, 32], strides = [1, 1]} : vector<8x96xf32> to vector<8x32xf32>
    %360 = vector.extract_strided_slice %355 {offsets = [0, 64], sizes = [8, 32], strides = [1, 1]} : vector<8x96xf32> to vector<8x32xf32>
    %361 = arith.mulf %359, %341 : vector<8x32xf32>
    %362 = arith.mulf %358, %357 : vector<8x32xf32>
    %363 = arith.addf %361, %362 : vector<8x32xf32>
    %364 = math.tanh %363 : vector<8x32xf32>
    %365 = arith.mulf %360, %364 : vector<8x32xf32>
    %c7_i32_99 = arith.constant 7 : i32
    %c8_i32_100 = arith.constant 8 : i32
    %366 = arith.muli %c7_i32_99, %c8_i32_100 : i32
    %367 = tpu.assume_multiple %366, 8 : i32
    %368 = arith.index_cast %367 : i32 to index
    %c0_101 = arith.constant 0 : index
    %369 = vector.load %arg11[%368, %c0_101] : memref<64x128xf32, #tpu.memory_space<vmem>>, vector<8x128xf32>
    %cst_102 = arith.constant dense<0.000000e+00> : vector<8x128xf32>
    %370 = tpu.matmul %365, %209, %cst_102 {dimension_numbers = #tpu.dot_dimension_numbers<[1], [0], [0], [1], [0, 0, 1, 1], [], []>} : vector<8x32xf32>, vector<32x128xf32>, vector<8x128xf32> -> vector<8x128xf32>
    %371 = arith.addf %369, %370 : vector<8x128xf32>
    %372 = vector.extract_strided_slice %371 {offsets = [0, 0], sizes = [8, 96], strides = [1, 1]} : vector<8x128xf32> to vector<8x96xf32>
    %373 = arith.negf %372 : vector<8x96xf32>
    %374 = math.exp %373 : vector<8x96xf32>
    %cst_103 = arith.constant 1.000000e+00 : f32
    %375 = vector.broadcast %cst_103 : f32 to vector<8x96xf32>
    %376 = arith.addf %375, %374 : vector<8x96xf32>
    %377 = arith.divf %375, %376 : vector<8x96xf32>
    %378 = vector.extract_strided_slice %371 {offsets = [0, 96], sizes = [8, 32], strides = [1, 1]} : vector<8x128xf32> to vector<8x32xf32>
    %379 = math.tanh %378 : vector<8x32xf32>
    %380 = vector.extract_strided_slice %377 {offsets = [0, 0], sizes = [8, 32], strides = [1, 1]} : vector<8x96xf32> to vector<8x32xf32>
    %381 = vector.extract_strided_slice %377 {offsets = [0, 32], sizes = [8, 32], strides = [1, 1]} : vector<8x96xf32> to vector<8x32xf32>
    %382 = vector.extract_strided_slice %377 {offsets = [0, 64], sizes = [8, 32], strides = [1, 1]} : vector<8x96xf32> to vector<8x32xf32>
    %383 = arith.mulf %381, %363 : vector<8x32xf32>
    %384 = arith.mulf %380, %379 : vector<8x32xf32>
    %385 = arith.addf %383, %384 : vector<8x32xf32>
    %386 = math.tanh %385 : vector<8x32xf32>
    %387 = arith.mulf %382, %386 : vector<8x32xf32>
    %c8_i32_104 = arith.constant 8 : i32
    %c0_105 = arith.constant 0 : index
    %c0_106 = arith.constant 0 : index
    %388 = vector.load %arg7[%c0_105, %c0_106] : memref<64x128xf32, #tpu.memory_space<vmem>>, vector<32x128xf32>
    %cst_107 = arith.constant dense<0.000000e+00> : vector<8x128xf32>
    %389 = tpu.matmul %199, %388, %cst_107 {dimension_numbers = #tpu.dot_dimension_numbers<[1], [0], [0], [1], [0, 0, 1, 1], [], []>} : vector<8x32xf32>, vector<32x128xf32>, vector<8x128xf32> -> vector<8x128xf32>
    %c32 = arith.constant 32 : index
    %c0_108 = arith.constant 0 : index
    %390 = vector.load %arg7[%c32, %c0_108] : memref<64x128xf32, #tpu.memory_space<vmem>>, vector<32x128xf32>
    %cst_109 = arith.constant dense<0.000000e+00> : vector<8x128xf32>
    %391 = tpu.matmul %387, %390, %cst_109 {dimension_numbers = #tpu.dot_dimension_numbers<[1], [0], [0], [1], [0, 0, 1, 1], [], []>} : vector<8x32xf32>, vector<32x128xf32>, vector<8x128xf32> -> vector<8x128xf32>
    %392 = arith.addf %389, %391 : vector<8x128xf32>
    %c0_110 = arith.constant 0 : index
    %c0_111 = arith.constant 0 : index
    %393 = vector.load %arg8[%c0_110, %c0_111] : memref<1x128xf32, #tpu.memory_space<vmem>>, vector<1x128xf32>
    %394 = vector.broadcast %393 : vector<1x128xf32> to vector<8x128xf32>
    %395 = arith.addf %392, %394 : vector<8x128xf32>
    %c0_112 = arith.constant 0 : index
    %c0_113 = arith.constant 0 : index
    %396 = vector.load %arg9[%c0_112, %c0_113] : memref<8x128xf32, #tpu.memory_space<vmem>>, vector<8x128xf32>
    tpu.vector_store %arg9[%c0_112, %c0_113], %395 {strides = array<i32>} : memref<8x128xf32, #tpu.memory_space<vmem>>, vector<8x128xf32>,
    return
  }
}

</mosaic_0001>

<bundles_post_ra>
// kernel: tpu_custom_call.1
= control target key start
LH: loop header
LB: loop body
LE: loop exit
PB: predicated region body
PF: predicated region fallthrough
CT: control target
= control target key end

     0   :  { %14 = vsyncpa [#allocation5], 0  ;;  %s2062_s0 = inlined_call_operand.vmem [shape: f32[64,32], index: 0, kind: input, shape index: {}]   ;;  %s2063_s1 = inlined_call_operand.vmem [shape: f32[32,128], index: 1, kind: input, shape index: {}]   ;;  %s2064_s2 = inlined_call_operand.hbm [shape: f32[32,128], index: 2, kind: input, shape index: {}]   ;;  %s2065_s3 = inlined_call_operand.vmem [shape: f32[1,128], index: 3, kind: input, shape index: {}]   ;;  %s2066_s4 = inlined_call_operand.hbm [shape: f32[32,128], index: 4, kind: input, shape index: {}]   ;;  %s2067_s5 = inlined_call_operand.hbm [shape: f32[32,128], index: 5, kind: input, shape index: {}]   ;;  %s2068_s6 = inlined_call_operand.vmem [shape: f32[1,128], index: 6, kind: input, shape index: {}]   ;;  %s2069_s7 = inlined_call_operand.vmem [shape: f32[64,128], index: 7, kind: input, shape index: {}]   ;;  %s2070_s8 = inlined_call_operand.vmem [shape: f32[1,128], index: 8, kind: input, shape index: {}]   ;;  %s2071_s9 = inlined_call_operand.hbm [shape: f32[8,128], index: 9, kind: output, shape index: {}]  }
   0x1   :  { %15 = vsyncpa [#allocation8], 0 }
   0x2   :  { %16 = vsyncpa [#allocation6], 0  ;;  %s40_s11 = sshll.u32 %s2066_s4, 4  ;;  %s1687_s12 = smov [#allocation7]   ;;  %s41_s11 = int_to_ptr.hbm [resolvable:$true] %s40_s11 }
   0x3   :  { %s42_s13 = sshll.u32 %s1687_s12, 4  ;;  %s25_s16 = sshll.u32 %s2064_s2, 4  ;;  %s43_s13 = int_to_ptr.vmem [resolvable:$true] %s42_s13  ;;  %s26_s16 = int_to_ptr.hbm [resolvable:$true] %s25_s16 }
   0x4   :  { %s1688_s17 = smov 128   ;;  %s1689_s18 = smov 8  }
   0x5   :  { %48 = dma.hbm_to_vmem [thread:$0]  %s41_s11, 512, %s43_s13, [#allocation8], %s1688_s17, %s1688_s17, %s1689_s18  }
   0x6   :  { %s1690_s19 = smov [#allocation4]   ;;  %s53_s23 = sshll.u32 %s2067_s5, 4  ;;  %s54_s23 = int_to_ptr.hbm [resolvable:$true] %s53_s23 }
   0x7   :  { %s27_s20 = sshll.u32 %s1690_s19, 4  ;;  %s1691_s4 = smov [#allocation9]   ;;  %s28_s20 = int_to_ptr.vmem [resolvable:$true] %s27_s20 }
   0x8   :  { %33 = dma.hbm_to_vmem [thread:$0]  %s26_s16, 512, %s28_s20, [#allocation5], %s1688_s17, %s1688_s17, %s1689_s18  }
   0x9   :  { %s55_s24 = sshll.u32 %s1691_s4, 4  ;;  %s56_s24 = int_to_ptr.vmem [resolvable:$true] %s55_s24 }
   0xa   :  { %61 = dma.hbm_to_vmem [thread:$0]  %s54_s23, 512, %s56_s24, [#allocation8], %s1688_s17, %s1688_s17, %s1689_s18  }
   0xb   :  { %1681 = dma.done.wait [#allocation5], 512  }
   0xc   :  { %1682 = vsyncadd [#allocation5], 4294966784 }
   0xd   :  { %1683 = dma.done.wait [#allocation8], 1024  }
   0xe   :  { %1684 = vsyncadd [#allocation8], 4294966272  ;;  %v91_v0 = vld [vmem:[%s2063_s1 + $0x18] sm:$0xff]  ;;  %v90_v1 = vld [vmem:[%s2063_s1 + $0x10] sm:$0xff]  ;;  %vm96_vm0 = vcmask 261120   ;;  %v1692_v9 = vmov 0.0  }
   0xf   :  { %v1761_v2 = vld [vmem:[#allocation4 + $0x18] sm:$0xff]  ;;  %133 = vmatpush.msra.mxu0 %v91_v0  ;;  %v1764_v3 = vld [vmem:[#allocation4 + $0x10] sm:$0xff]  ;;  %v89_v4 = vld [vmem:[%s2063_s1 + $0x8] sm:$0xff]  ;;  %s1693_s13 = smov 32   ;;  %s1694_s14 = smov 64  }
  0x10   :  { %190 = vmatpush.msra.mxu1 %v1761_v2  ;;  %v1769_v5 = vld [vmem:[#allocation4 + $0x8] sm:$0xff]  ;;  %257 = vmatpush.msra.mxu2 %v1761_v2  ;;  %v88_v6 = vld [vmem:[%s2063_s1] sm:$0xff]  ;;  %v82_v63 = vld [vmem:[%s2062_s0 + $0x10] sm:$0xff]  ;;  %s1695_s4 = smov [#allocation10]  }
  0x11   :  { %529 = vmatpush.msra.mxu3 %v1761_v2  ;;  %134 = vmatpush.msra.mxu0 %v90_v1  ;;  %v1777_v7 = vld [vmem:[#allocation4] sm:$0xff]  ;;  %v81_v37 = vld [vmem:[%s2062_s0 + $0x8] sm:$0xff]  ;;  %v83_v0 = vld [vmem:[%s2062_s0 + $0x18] sm:$0xff]  ;;  %s1383_s24 = sshll.u32 %s1695_s4, 4  ;;  %s1384_s24 = int_to_ptr.vmem [resolvable:$true] %s1383_s24 }
  0x12   :  { %191 = vmatpush.msra.mxu1 %v1764_v3  ;;  %258 = vmatpush.msra.mxu2 %v1764_v3  ;;  %v80_v8 = vld [vmem:[%s2062_s0] sm:$0xff] }
  0x13   :  { %530 = vmatpush.msra.mxu3 %v1764_v3  ;;  %135 = vmatpush.msra.mxu0 %v89_v4  ;;  %v1811_v10 = vld [vmem:[%s2065_s3] ss:$0 sm:$0xff] }
  0x14   :  { %192 = vmatpush.msra.mxu1 %v1769_v5  ;;  %259 = vmatpush.msra.mxu2 %v1769_v5  ;;  %v84_v1 = vld [vmem:[%s2062_s0 + $0x20] sm:$0xff] }
  0x15   :  { %531 = vmatpush.msra.mxu3 %v1769_v5  ;;  %136 = vmatpush.msra.mxu0 %v88_v6  ;;  %v87_v6 = vld [vmem:[%s2062_s0 + $0x38] sm:$0xff] }
  0x16   :  { %193 = vmatpush.msra.mxu1 %v1777_v7  ;;  %1396 = vmatmul.msk.f32.vlgmr.msra.gmra.mxu0 %vm96_vm0, %v80_v8 }
  0x17   :  { %194 = vmatmul.f32.vlgmr.msra.gmra.mxu1 %v1692_v9  ;;  %260 = vmatpush.msra.mxu2 %v1777_v7 }
  0x18   :  { %325 = vmatpush.msrb.mxu0 %v1761_v2  ;;  %393 = vmatpush.msrb.mxu1 %v1761_v2 }
  0x19   :  { %461 = vmatpush.msrb.mxu2 %v1761_v2  ;;  %532 = vmatpush.msra.mxu3 %v1777_v7 }
  0x1a   :  { %326 = vmatpush.msrb.mxu0 %v1764_v3  ;;  %394 = vmatpush.msrb.mxu1 %v1764_v3 }
  0x1b   :  { %462 = vmatpush.msrb.mxu2 %v1764_v3 }
  0x1c   :  { %327 = vmatpush.msrb.mxu0 %v1769_v5  ;;  %395 = vmatpush.msrb.mxu1 %v1769_v5 }
  0x1d   :  { %463 = vmatpush.msrb.mxu2 %v1769_v5 }
  0x1e   :  { %328 = vmatpush.msrb.mxu0 %v1777_v7  ;;  %396 = vmatpush.msrb.mxu1 %v1777_v7 }
  0x1f   :  { %464 = vmatpush.msrb.mxu2 %v1777_v7  ;;  %1397 = vmatmul.msk.f32.gmra.mxu0 %vm96_vm0, %v81_v37 }
  0x20   :  { %597 = vmatpush.msra.mxu1 %v1761_v2 }
  0x22   :  { %598 = vmatpush.msra.mxu1 %v1764_v3 }
  0x24   :  { %599 = vmatpush.msra.mxu1 %v1769_v5 }
  0x26   :  { %600 = vmatpush.msra.mxu1 %v1777_v7 }
  0x27   :  { %1398 = vmatmul.msk.f32.gmra.mxu0 %vm96_vm0, %v82_v63 }
  0x2f   :  { %1399 = vmatmul.msk.f32.gmra.mxu0 %vm96_vm0, %v83_v0 }
  0x37   :  { %1400 = vmatmul.msk.f32.gmra.mxu0 %vm96_vm0, %v84_v1 }
  0x93   :  { %v138_v11 = vpop.f32.mrf.mxu0 }
  0x94   :  { %v195_v12 = vpop.f32.mrf.mxu1  ;;  %v139_v13 = vadd.f32 %v1811_v10, %v138_v11 }
  0x96   :  { %v198_v14 = vadd.f32 %v195_v12, %v139_v13 }
  0x98   :  { %1456 = vtanh.f32 %v198_v14  ;;  %v1404_v16 = vmul.f32 -1.442695, %v198_v14 }
  0x9a   :  { %1458 = vpow2.f32 %v1404_v16 }
  0x9c   :  { %v141_v39 = vpop.f32.mrf.mxu0 }
  0x9d   :  { %v142_v40 = vadd.f32 %v1811_v10, %v141_v39 }
  0x9e   :  { %v1457_v15 = vpop.eup %1456 }
  0x9f   :  { %221 = vrot.lane.b32.xlu0 %v1457_v15, %s1693_s13 }
  0xa0   :  { %v1459_v17 = vpop.eup %1458 }
  0xa1   :  { %v202_v18 = vadd.f32 1.0, %v1459_v17 }
  0xa3   :  { %1460 = vrcp.f32 %v202_v18  ;;  %v214_v24 = vand.u32 2147483648, %v202_v18  ;;  %vm208_vm2 = vweird.f32 %v202_v18  ;;  %v212_v25 = vand.u32 2147483647, %v202_v18 }
  0xa4   :  { %v144_v8 = vpop.f32.mrf.mxu0 }
  0xa5   :  { %v215_v27 = vor.u32 1.1754944e-38, %v214_v24  ;;  %vm213_vm4 = vcmp.eq.f32.partialorder %v212_v25, 8.507059e+37  ;;  %v145_v16 = vadd.f32 %v1811_v10, %v144_v8 }
  0xa9   :  { %v1461_v19 = vpop.eup %1460 }
  0xaa   :  { %v204_v20 = vmul.f32 %v1461_v19, %v202_v18  ;;  %vm209_vm1 = vweird.f32 %v1461_v19 }
  0xab   :  { %vm210_vm3 = vmor %vm208_vm2, %vm209_vm1 }
  0xac   :  { %v205_v21 = vsub.f32 1.0, %v204_v20  ;;  %v147_v11 = vpop.f32.mrf.mxu0 }
  0xae   :  { %v206_v22 = vmul.f32 %v1461_v19, %v205_v21 }
  0xb0   :  { %v207_v23 = vadd.f32 %v1461_v19, %v206_v22 }
  0xb2   :  { %v211_v26 = vsel %vm210_vm3, %v1461_v19, %v207_v23 }
  0xb3   :  { %v216_v29 = vsel %vm213_vm4, %v215_v27, %v211_v26 }
  0xb4   :  { %v219_v31 = vmul.f32 0.0, %v216_v29  ;;  %v1859_v12 = vpop.f32.mrf.mxu0 }
 0x111   :  { %v222_v28 = vpop.permute.xlu0 %221 }
 0x112   :  { %v224_v30 = vmul.f32 %v222_v28, %v216_v29 }
 0x114   :  { %226 = vrot.lane.b32.xlu0 %v224_v30, %s1693_s13 }
 0x186   :  { %v227_v32 = vpop.permute.xlu0 %226 }
 0x187   :  { %v229_v33 = vadd.f32 %v227_v32, %v219_v31 }
 0x189   :  { %1462 = vtanh.f32 %v229_v33 }
 0x18f   :  { %v1463_v34 = vpop.eup %1462 }
 0x190   :  { %232 = vrot.lane.b32.xlu1 %v1463_v34, %s1693_s13 }
 0x202   :  { %v233_v35 = vpop.permute.xlu1 %232 }
 0x203   :  { %v235_v36 = vmul.f32 %v233_v35, %v216_v29 }
 0x205   :  { %237 = vrot.lane.b32.xlu1 %v235_v36, %s1694_s14 }
 0x277   :  { %v238_v38 = vpop.permute.xlu1 %237 }
 0x278   :  { %240 = vst.msk [vmem:[#allocation2] sm:$0xff] %vm96_vm0, %v238_v38  ;;  %1405 = vmatmul.msk.f32.vlgmr.msra.gmra.mxu2 %vm96_vm0, %v238_v38 }
 0x279   :  { %665 = vmatpush.msra.mxu2 %v1761_v2  ;;  %v85_v2 = vld [vmem:[%s2062_s0 + $0x28] sm:$0xff] }
 0x27a   :  { %1401 = vmatmul.msk.f32.gmra.mxu0 %vm96_vm0, %v85_v2 }
 0x27b   :  { %666 = vmatpush.msra.mxu2 %v1764_v3 }
 0x27d   :  { %667 = vmatpush.msra.mxu2 %v1769_v5  ;;  %v86_v5 = vld [vmem:[%s2062_s0 + $0x30] sm:$0xff] }
 0x27f   :  { %668 = vmatpush.msra.mxu2 %v1777_v7 }
 0x282   :  { %1402 = vmatmul.msk.f32.gmra.mxu0 %vm96_vm0, %v86_v5 }
 0x28a   :  { %1403 = vmatmul.msk.f32.gmra.mxu0 %vm96_vm0, %v87_v6 }
 0x2f7   :  { %v1861_v13 = vpop.f32.mrf.mxu0 }
 0x2fb   :  { %v262_v41 = vpop.f32.mrf.mxu2 }
 0x2fc   :  { %v265_v42 = vadd.f32 %v262_v41, %v142_v40 }
 0x2fe   :  { %1464 = vtanh.f32 %v265_v42  ;;  %v1406_v44 = vmul.f32 -1.442695, %v265_v42  ;;  %v148_v42 = vadd.f32 %v1811_v10, %v147_v11 }
 0x2ff   :  { %v1863_v14 = vpop.f32.mrf.mxu0 }
 0x300   :  { %1466 = vpow2.f32 %v1406_v44 }
 0x304   :  { %v1465_v43 = vpop.eup %1464 }
 0x305   :  { %288 = vrot.lane.b32.xlu2 %v1465_v43, %s1693_s13 }
 0x306   :  { %v1467_v45 = vpop.eup %1466 }
 0x307   :  { %v269_v46 = vadd.f32 1.0, %v1467_v45  ;;  %v1865_v15 = vpop.f32.mrf.mxu0 }
 0x309   :  { %1468 = vrcp.f32 %v269_v46  ;;  %v281_v52 = vand.u32 2147483648, %v269_v46  ;;  %vm275_vm6 = vweird.f32 %v269_v46  ;;  %v279_v53 = vand.u32 2147483647, %v269_v46 }
 0x30b   :  { %v282_v55 = vor.u32 1.1754944e-38, %v281_v52  ;;  %vm280_vm8 = vcmp.eq.f32.partialorder %v279_v53, 8.507059e+37 }
 0x30f   :  { %v1469_v47 = vpop.eup %1468 }
 0x310   :  { %v271_v48 = vmul.f32 %v1469_v47, %v269_v46  ;;  %vm276_vm5 = vweird.f32 %v1469_v47 }
 0x311   :  { %vm277_vm7 = vmor %vm275_vm6, %vm276_vm5 }
 0x312   :  { %v272_v49 = vsub.f32 1.0, %v271_v48 }
 0x314   :  { %v273_v50 = vmul.f32 %v1469_v47, %v272_v49 }
 0x316   :  { %v274_v51 = vadd.f32 %v1469_v47, %v273_v50 }
 0x318   :  { %v278_v54 = vsel %vm277_vm7, %v1469_v47, %v274_v51 }
 0x319   :  { %v283_v57 = vsel %vm280_vm8, %v282_v55, %v278_v54 }
 0x31a   :  { %v286_v59 = vmul.f32 %v283_v57, %v229_v33 }
 0x35f   :  { %v289_v56 = vpop.permute.xlu2 %288 }
 0x360   :  { %v291_v58 = vmul.f32 %v289_v56, %v283_v57 }
 0x362   :  { %293 = vrot.lane.b32.xlu2 %v291_v58, %s1693_s13 }
 0x3bc   :  { %v294_v60 = vpop.permute.xlu2 %293 }
 0x3bd   :  { %v296_v61 = vadd.f32 %v294_v60, %v286_v59 }
 0x3bf   :  { %1470 = vtanh.f32 %v296_v61 }
 0x3c5   :  { %v1471_v62 = vpop.eup %1470 }
 0x3c6   :  { %299 = vrot.lane.b32.xlu0 %v1471_v62, %s1693_s13 }
 0x438   :  { %v300_v3 = vpop.permute.xlu0 %299 }
 0x439   :  { %v302_v4 = vmul.f32 %v300_v3, %v283_v57 }
 0x43b   :  { %304 = vrot.lane.b32.xlu1 %v302_v4, %s1694_s14  ;;  %v151_v4 = vadd.f32 %v1811_v10, %v1859_v12 }
 0x4ad   :  { %v305_v7 = vpop.permute.xlu1 %304 }
 0x4ae   :  { %308 = vst.msk [vmem:[#allocation2 + $0x8] sm:$0xff] %vm96_vm0, %v305_v7  ;;  %1407 = vmatmul.msk.f32.vlgmr.msrb.gmra.mxu0 %vm96_vm0, %v305_v7 }
 0x52b   :  { %v330_v17 = vpop.f32.mrf.mxu0 }
 0x52c   :  { %v333_v18 = vadd.f32 %v330_v17, %v145_v16 }
 0x52e   :  { %1472 = vtanh.f32 %v333_v18  ;;  %v1408_v20 = vmul.f32 -1.442695, %v333_v18 }
 0x530   :  { %1474 = vpow2.f32 %v1408_v20 }
 0x534   :  { %v1473_v19 = vpop.eup %1472 }
 0x535   :  { %356 = vrot.lane.b32.xlu2 %v1473_v19, %s1693_s13 }
 0x536   :  { %v1475_v21 = vpop.eup %1474 }
 0x537   :  { %v337_v22 = vadd.f32 1.0, %v1475_v21 }
 0x539   :  { %1476 = vrcp.f32 %v337_v22  ;;  %v349_v28 = vand.u32 2147483648, %v337_v22  ;;  %vm343_vm10 = vweird.f32 %v337_v22  ;;  %v347_v29 = vand.u32 2147483647, %v337_v22 }
 0x53b   :  { %v350_v31 = vor.u32 1.1754944e-38, %v349_v28  ;;  %vm348_vm12 = vcmp.eq.f32.partialorder %v347_v29, 8.507059e+37 }
 0x53f   :  { %v1477_v23 = vpop.eup %1476 }
 0x540   :  { %v339_v24 = vmul.f32 %v1477_v23, %v337_v22  ;;  %vm344_vm9 = vweird.f32 %v1477_v23 }
 0x541   :  { %vm345_vm11 = vmor %vm343_vm10, %vm344_vm9 }
 0x542   :  { %v340_v25 = vsub.f32 1.0, %v339_v24 }
 0x544   :  { %v341_v26 = vmul.f32 %v1477_v23, %v340_v25 }
 0x546   :  { %v342_v27 = vadd.f32 %v1477_v23, %v341_v26 }
 0x548   :  { %v346_v30 = vsel %vm345_vm11, %v1477_v23, %v342_v27 }
 0x549   :  { %v351_v33 = vsel %vm348_vm12, %v350_v31, %v346_v30 }
 0x54a   :  { %v354_v35 = vmul.f32 %v351_v33, %v296_v61 }
 0x58f   :  { %v357_v32 = vpop.permute.xlu2 %356 }
 0x590   :  { %v359_v34 = vmul.f32 %v357_v32, %v351_v33 }
 0x592   :  { %361 = vrot.lane.b32.xlu0 %v359_v34, %s1693_s13  ;;  %v728_v34 = vld [vmem:[#allocation7 + $0x18] sm:$0xff] }
 0x593   :  { %769 = vmatpush.msrb.mxu3 %v728_v34 }
 0x604   :  { %v362_v36 = vpop.permute.xlu0 %361 }
 0x605   :  { %v364_v37 = vadd.f32 %v362_v36, %v354_v35  ;;  %v727_v35 = vld [vmem:[#allocation7 + $0x10] sm:$0xff]  ;;  %v726_v36 = vld [vmem:[#allocation7 + $0x8] sm:$0xff] }
 0x606   :  { %770 = vmatpush.msrb.mxu3 %v727_v35 }
 0x607   :  { %1478 = vtanh.f32 %v364_v37 }
 0x608   :  { %771 = vmatpush.msrb.mxu3 %v726_v36 }
 0x60d   :  { %v1479_v38 = vpop.eup %1478 }
 0x60e   :  { %367 = vrot.lane.b32.xlu1 %v1479_v38, %s1693_s13 }
 0x680   :  { %v368_v39 = vpop.permute.xlu1 %367 }
 0x681   :  { %v370_v40 = vmul.f32 %v368_v39, %v351_v33  ;;  %v717_v39 = vld [vmem:[#allocation2] sm:$0xff] }
 0x683   :  { %372 = vrot.lane.b32.xlu2 %v370_v40, %s1694_s14  ;;  %v718_v40 = vld [vmem:[#allocation2 + $0x8] sm:$0xff] }
 0x6dd   :  { %v373_v41 = vpop.permute.xlu2 %372 }
 0x6de   :  { %376 = vst.msk [vmem:[#allocation2 + $0x10] sm:$0xff] %vm96_vm0, %v373_v41  ;;  %1409 = vmatmul.msk.f32.vlgmr.msrb.gmra.mxu1 %vm96_vm0, %v373_v41 }
 0x6e5   :  { %v719_v41 = vld [vmem:[#allocation2 + $0x10] sm:$0xff] }
 0x75b   :  { %v398_v43 = vpop.f32.mrf.mxu1 }
 0x75c   :  { %v401_v44 = vadd.f32 %v398_v43, %v148_v42 }
 0x75e   :  { %1480 = vtanh.f32 %v401_v44  ;;  %v1410_v46 = vmul.f32 -1.442695, %v401_v44  ;;  %v154_v44 = vadd.f32 %v1811_v10, %v1861_v13 }
 0x760   :  { %1482 = vpow2.f32 %v1410_v46 }
 0x764   :  { %v1481_v45 = vpop.eup %1480 }
 0x765   :  { %424 = vrot.lane.b32.xlu0 %v1481_v45, %s1693_s13 }
 0x766   :  { %v1483_v47 = vpop.eup %1482 }
 0x767   :  { %v405_v48 = vadd.f32 1.0, %v1483_v47 }
 0x769   :  { %1484 = vrcp.f32 %v405_v48  ;;  %v417_v54 = vand.u32 2147483648, %v405_v48  ;;  %vm411_vm14 = vweird.f32 %v405_v48  ;;  %v415_v55 = vand.u32 2147483647, %v405_v48 }
 0x76b   :  { %v418_v57 = vor.u32 1.1754944e-38, %v417_v54  ;;  %vm416_vm1 = vcmp.eq.f32.partialorder %v415_v55, 8.507059e+37 }
 0x76f   :  { %v1485_v49 = vpop.eup %1484 }
 0x770   :  { %v407_v50 = vmul.f32 %v1485_v49, %v405_v48  ;;  %vm412_vm13 = vweird.f32 %v1485_v49 }
 0x771   :  { %vm413_vm15 = vmor %vm411_vm14, %vm412_vm13 }
 0x772   :  { %v408_v51 = vsub.f32 1.0, %v407_v50 }
 0x774   :  { %v409_v52 = vmul.f32 %v1485_v49, %v408_v51 }
 0x776   :  { %v410_v53 = vadd.f32 %v1485_v49, %v409_v52 }
 0x778   :  { %v414_v56 = vsel %vm413_vm15, %v1485_v49, %v410_v53 }
 0x779   :  { %v419_v59 = vsel %vm416_vm1, %v418_v57, %v414_v56 }
 0x77a   :  { %v422_v61 = vmul.f32 %v419_v59, %v364_v37  ;;  %v725_v37 = vld [vmem:[#allocation7] sm:$0xff] }
 0x77b   :  { %772 = vmatpush.msrb.mxu3 %v725_v37 }
 0x7d7   :  { %v425_v58 = vpop.permute.xlu0 %424 }
 0x7d8   :  { %v427_v60 = vmul.f32 %v425_v58, %v419_v59 }
 0x7da   :  { %429 = vrot.lane.b32.xlu1 %v427_v60, %s1693_s13 }
 0x84c   :  { %v430_v62 = vpop.permute.xlu1 %429 }
 0x84d   :  { %v432_v63 = vadd.f32 %v430_v62, %v422_v61 }
 0x84f   :  { %1486 = vtanh.f32 %v432_v63 }
 0x855   :  { %v1487_v0 = vpop.eup %1486 }
 0x856   :  { %435 = vrot.lane.b32.xlu2 %v1487_v0, %s1693_s13 }
 0x8b0   :  { %v436_v1 = vpop.permute.xlu2 %435 }
 0x8b1   :  { %v438_v2 = vmul.f32 %v436_v1, %v419_v59 }
 0x8b3   :  { %440 = vrot.lane.b32.xlu0 %v438_v2, %s1694_s14 }
 0x925   :  { %v441_v3 = vpop.permute.xlu0 %440 }
 0x926   :  { %444 = vst.msk [vmem:[#allocation2 + $0x18] sm:$0xff] %vm96_vm0, %v441_v3  ;;  %1411 = vmatmul.msk.f32.vlgmr.msrb.gmra.mxu2 %vm96_vm0, %v441_v3 }
 0x92d   :  { %v720_v42 = vld [vmem:[#allocation2 + $0x18] sm:$0xff] }
 0x9a9   :  { %v466_v5 = vpop.f32.mrf.mxu2 }
 0x9aa   :  { %v469_v6 = vadd.f32 %v466_v5, %v151_v4  ;;  %v1903_v4 = vld [vmem:[#allocation9 + $0x18] sm:$0xff]  ;;  %v1905_v5 = vld [vmem:[#allocation9 + $0x10] sm:$0xff] }
 0x9ab   :  { %823 = vmatpush.msrb.mxu1 %v1903_v4  ;;  %887 = vmatpush.msrb.mxu2 %v1903_v4 }
 0x9ac   :  { %1488 = vtanh.f32 %v469_v6  ;;  %v1412_v8 = vmul.f32 -1.442695, %v469_v6  ;;  %v1909_v6 = vld [vmem:[#allocation9 + $0x8] sm:$0xff] }
 0x9ad   :  { %824 = vmatpush.msrb.mxu1 %v1905_v5  ;;  %888 = vmatpush.msrb.mxu2 %v1905_v5 }
 0x9ae   :  { %1490 = vpow2.f32 %v1412_v8 }
 0x9af   :  { %825 = vmatpush.msrb.mxu1 %v1909_v6  ;;  %889 = vmatpush.msrb.mxu2 %v1909_v6 }
 0x9b2   :  { %v1489_v7 = vpop.eup %1488 }
 0x9b3   :  { %492 = vrot.lane.b32.xlu1 %v1489_v7, %s1693_s13  ;;  %v1913_v7 = vld [vmem:[#allocation9] sm:$0xff] }
 0x9b4   :  { %v1491_v11 = vpop.eup %1490  ;;  %826 = vmatpush.msrb.mxu1 %v1913_v7  ;;  %890 = vmatpush.msrb.mxu2 %v1913_v7 }
 0x9b5   :  { %v473_v16 = vadd.f32 1.0, %v1491_v11 }
 0x9b7   :  { %1492 = vrcp.f32 %v473_v16  ;;  %v485_v22 = vand.u32 2147483648, %v473_v16  ;;  %vm479_vm3 = vweird.f32 %v473_v16  ;;  %v483_v12 = vand.u32 2147483647, %v473_v16 }
 0x9b9   :  { %v486_v24 = vor.u32 1.1754944e-38, %v485_v22  ;;  %vm484_vm5 = vcmp.eq.f32.partialorder %v483_v12, 8.507059e+37 }
 0x9bd   :  { %v1493_v17 = vpop.eup %1492 }
 0x9be   :  { %v475_v18 = vmul.f32 %v1493_v17, %v473_v16  ;;  %vm480_vm2 = vweird.f32 %v1493_v17  ;;  %v157_v16 = vadd.f32 %v1811_v10, %v1863_v14 }
 0x9bf   :  { %vm481_vm4 = vmor %vm479_vm3, %vm480_vm2 }
 0x9c0   :  { %v476_v19 = vsub.f32 1.0, %v475_v18 }
 0x9c2   :  { %v477_v20 = vmul.f32 %v1493_v17, %v476_v19  ;;  %v1936_v19 = vld [vmem:[%s2068_s6] ss:$0 sm:$0xff] }
 0x9c4   :  { %v478_v21 = vadd.f32 %v1493_v17, %v477_v20 }
 0x9c6   :  { %v482_v23 = vsel %vm481_vm4, %v1493_v17, %v478_v21 }
 0x9c7   :  { %v487_v26 = vsel %vm484_vm5, %v486_v24, %v482_v23 }
 0x9c8   :  { %v490_v28 = vmul.f32 %v487_v26, %v432_v63 }
 0xa25   :  { %v493_v25 = vpop.permute.xlu1 %492 }
 0xa26   :  { %v495_v27 = vmul.f32 %v493_v25, %v487_v26 }
 0xa28   :  { %497 = vrot.lane.b32.xlu2 %v495_v27, %s1693_s13 }
 0xa82   :  { %v498_v29 = vpop.permute.xlu2 %497 }
 0xa83   :  { %v500_v30 = vadd.f32 %v498_v29, %v490_v28 }
 0xa85   :  { %1494 = vtanh.f32 %v500_v30 }
 0xa8b   :  { %v1495_v31 = vpop.eup %1494 }
 0xa8c   :  { %503 = vrot.lane.b32.xlu0 %v1495_v31, %s1693_s13 }
 0xafe   :  { %v504_v32 = vpop.permute.xlu0 %503 }
 0xaff   :  { %v506_v33 = vmul.f32 %v504_v32, %v487_v26 }
 0xb01   :  { %508 = vrot.lane.b32.xlu1 %v506_v33, %s1694_s14 }
 0xb73   :  { %v509_v38 = vpop.permute.xlu1 %508 }
 0xb74   :  { %512 = vst.msk [vmem:[#allocation2 + $0x20] sm:$0xff] %vm96_vm0, %v509_v38  ;;  %1413 = vmatmul.msk.f32.vlgmr.msra.gmra.mxu3 %vm96_vm0, %v509_v38 }
 0xb7b   :  { %v721_v43 = vld [vmem:[#allocation2 + $0x20] sm:$0xff] }
 0xb7c   :  { %1419 = vmatmul.msk.f32.vlgmr.msrb.gmra.mxu3 %vm96_vm0, %v717_v39 }
 0xb84   :  { %1420 = vmatmul.msk.f32.gmra.mxu3 %vm96_vm0, %v718_v40 }
 0xb8c   :  { %1421 = vmatmul.msk.f32.gmra.mxu3 %vm96_vm0, %v719_v41 }
 0xb94   :  { %1422 = vmatmul.msk.f32.gmra.mxu3 %vm96_vm0, %v720_v42 }
 0xb9c   :  { %1423 = vmatmul.msk.f32.gmra.mxu3 %vm96_vm0, %v721_v43 }
 0xbf7   :  { %v534_v45 = vpop.f32.mrf.mxu3 }
 0xbf8   :  { %v537_v46 = vadd.f32 %v534_v45, %v154_v44 }
 0xbfa   :  { %1496 = vtanh.f32 %v537_v46  ;;  %v1414_v48 = vmul.f32 -1.442695, %v537_v46 }
 0xbfc   :  { %1498 = vpow2.f32 %v1414_v48 }
 0xc00   :  { %v1497_v47 = vpop.eup %1496 }
 0xc01   :  { %560 = vrot.lane.b32.xlu2 %v1497_v47, %s1693_s13 }
 0xc02   :  { %v1499_v49 = vpop.eup %1498 }
 0xc03   :  { %v541_v50 = vadd.f32 1.0, %v1499_v49 }
 0xc05   :  { %1500 = vrcp.f32 %v541_v50  ;;  %v553_v56 = vand.u32 2147483648, %v541_v50  ;;  %vm547_vm7 = vweird.f32 %v541_v50  ;;  %v551_v13 = vand.u32 2147483647, %v541_v50 }
 0xc07   :  { %v554_v58 = vor.u32 1.1754944e-38, %v553_v56  ;;  %vm552_vm9 = vcmp.eq.f32.partialorder %v551_v13, 8.507059e+37 }
 0xc0b   :  { %v1501_v51 = vpop.eup %1500 }
 0xc0c   :  { %v543_v52 = vmul.f32 %v1501_v51, %v541_v50  ;;  %vm548_vm6 = vweird.f32 %v1501_v51 }
 0xc0d   :  { %vm549_vm8 = vmor %vm547_vm7, %vm548_vm6 }
 0xc0e   :  { %v544_v53 = vsub.f32 1.0, %v543_v52 }
 0xc10   :  { %v545_v54 = vmul.f32 %v1501_v51, %v544_v53 }
 0xc12   :  { %v546_v55 = vadd.f32 %v1501_v51, %v545_v54 }
 0xc14   :  { %v550_v57 = vsel %vm549_vm8, %v1501_v51, %v546_v55 }
 0xc15   :  { %v555_v60 = vsel %vm552_vm9, %v554_v58, %v550_v57 }
 0xc16   :  { %v558_v62 = vmul.f32 %v555_v60, %v500_v30 }
 0xc5b   :  { %v561_v59 = vpop.permute.xlu2 %560 }
 0xc5c   :  { %v563_v61 = vmul.f32 %v561_v59, %v555_v60 }
 0xc5e   :  { %565 = vrot.lane.b32.xlu0 %v563_v61, %s1693_s13 }
 0xcd0   :  { %v566_v63 = vpop.permute.xlu0 %565 }
 0xcd1   :  { %v1898_v0 = vadd.f32 %v566_v63, %v558_v62 }
 0xcd3   :  { %1502 = vtanh.f32 %v1898_v0 }
 0xcd9   :  { %v1503_v1 = vpop.eup %1502 }
 0xcda   :  { %571 = vrot.lane.b32.xlu1 %v1503_v1, %s1693_s13 }
 0xd4c   :  { %v572_v2 = vpop.permute.xlu1 %571 }
 0xd4d   :  { %v574_v3 = vmul.f32 %v572_v2, %v555_v60 }
 0xd4f   :  { %576 = vrot.lane.b32.xlu2 %v574_v3, %s1694_s14 }
 0xda9   :  { %v577_v8 = vpop.permute.xlu2 %576 }
 0xdaa   :  { %580 = vst.msk [vmem:[#allocation2 + $0x28] sm:$0xff] %vm96_vm0, %v577_v8  ;;  %1415 = vmatmul.msk.f32.vlgmr.msra.gmra.mxu1 %vm96_vm0, %v577_v8 }
 0xdab   :  { %951 = vmatpush.msra.mxu1 %v1903_v4 }
 0xdad   :  { %952 = vmatpush.msra.mxu1 %v1905_v5 }
 0xdaf   :  { %953 = vmatpush.msra.mxu1 %v1909_v6 }
 0xdb1   :  { %v722_v11 = vld [vmem:[#allocation2 + $0x28] sm:$0xff]  ;;  %954 = vmatpush.msra.mxu1 %v1913_v7 }
 0xdb2   :  { %1424 = vmatmul.msk.f32.gmra.mxu3 %vm96_vm0, %v722_v11  ;;  %827 = vmatmul.f32.vlgmr.msrb.gmra.mxu1 %v1692_v9  ;;  %v774_v9 = vpop.f32.mrf.mxu3 }
 0xdb3   :  { %1079 = vmatpush.msrb.mxu1 %v1903_v4  ;;  %v775_v20 = vadd.f32 %v1936_v19, %v774_v9 }
 0xdb5   :  { %1080 = vmatpush.msrb.mxu1 %v1905_v5 }
 0xdb7   :  { %1081 = vmatpush.msrb.mxu1 %v1909_v6 }
 0xdb9   :  { %1082 = vmatpush.msrb.mxu1 %v1913_v7 }
 0xdba   :  { %v777_v3 = vpop.f32.mrf.mxu3 }
 0xdbb   :  { %v778_v8 = vadd.f32 %v1936_v19, %v777_v3 }
 0xe27   :  { %v602_v17 = vpop.f32.mrf.mxu1 }
 0xe28   :  { %v605_v18 = vadd.f32 %v602_v17, %v157_v16 }
 0xe2a   :  { %1504 = vtanh.f32 %v605_v18  ;;  %v1416_v10 = vmul.f32 -1.442695, %v605_v18 }
 0xe2f   :  { %v828_v21 = vpop.f32.mrf.mxu1 }
 0xe30   :  { %v1505_v22 = vpop.eup %1504  ;;  %v831_v12 = vadd.f32 %v828_v21, %v775_v20 }
 0xe31   :  { %628 = vrot.lane.b32.xlu0 %v1505_v22, %s1693_s13 }
 0xe32   :  { %1506 = vtanh.f32 %v831_v12  ;;  %v1427_v14 = vmul.f32 -1.442695, %v831_v12 }
 0xe33   :  { %1508 = vpow2.f32 %v1416_v10 }
 0xe34   :  { %1510 = vpow2.f32 %v1427_v14 }
 0xe38   :  { %v1507_v23 = vpop.eup %1506 }
 0xe39   :  { %854 = vrot.lane.b32.xlu1 %v1507_v23, %s1693_s13  ;;  %v1509_v24 = vpop.eup %1508 }
 0xe3a   :  { %v609_v25 = vadd.f32 1.0, %v1509_v24  ;;  %v1511_v26 = vpop.eup %1510 }
 0xe3b   :  { %v835_v27 = vadd.f32 1.0, %v1511_v26 }
 0xe3c   :  { %1512 = vrcp.f32 %v609_v25  ;;  %v621_v36 = vand.u32 2147483648, %v609_v25  ;;  %vm615_vm11 = vweird.f32 %v609_v25  ;;  %v619_v37 = vand.u32 2147483647, %v609_v25 }
 0xe3d   :  { %1514 = vrcp.f32 %v835_v27  ;;  %v847_v45 = vand.u32 2147483648, %v835_v27  ;;  %vm841_vm15 = vweird.f32 %v835_v27  ;;  %v845_v46 = vand.u32 2147483647, %v835_v27 }
 0xe3e   :  { %v622_v40 = vor.u32 1.1754944e-38, %v621_v36  ;;  %vm620_vm13 = vcmp.eq.f32.partialorder %v619_v37, 8.507059e+37  ;;  %v780_v37 = vpop.f32.mrf.mxu3 }
 0xe3f   :  { %v848_v48 = vor.u32 1.1754944e-38, %v847_v45  ;;  %vm846_vm2 = vcmp.eq.f32.partialorder %v845_v46, 8.507059e+37 }
 0xe42   :  { %v1513_v28 = vpop.eup %1512 }
 0xe43   :  { %v611_v29 = vmul.f32 %v1513_v28, %v609_v25  ;;  %v1515_v31 = vpop.eup %1514  ;;  %vm616_vm10 = vweird.f32 %v1513_v28 }
 0xe44   :  { %v837_v33 = vmul.f32 %v1515_v31, %v835_v27  ;;  %vm617_vm12 = vmor %vm615_vm11, %vm616_vm10  ;;  %vm842_vm14 = vweird.f32 %v1515_v31 }
 0xe45   :  { %v612_v30 = vsub.f32 1.0, %v611_v29  ;;  %vm843_vm1 = vmor %vm841_vm15, %vm842_vm14 }
 0xe46   :  { %v838_v35 = vsub.f32 1.0, %v837_v33 }
 0xe47   :  { %v613_v32 = vmul.f32 %v1513_v28, %v612_v30 }
 0xe48   :  { %v839_v39 = vmul.f32 %v1515_v31, %v838_v35 }
 0xe49   :  { %v614_v34 = vadd.f32 %v1513_v28, %v613_v32 }
 0xe4a   :  { %v840_v44 = vadd.f32 %v1515_v31, %v839_v39 }
 0xe4b   :  { %v618_v38 = vsel %vm617_vm12, %v1513_v28, %v614_v34 }
 0xe4c   :  { %v623_v42 = vsel %vm620_vm13, %v622_v40, %v618_v38  ;;  %v844_v47 = vsel %vm843_vm1, %v1515_v31, %v840_v44  ;;  %v781_v38 = vadd.f32 %v1936_v19, %v780_v37 }
 0xe4d   :  { %v849_v50 = vsel %vm846_vm2, %v848_v48, %v844_v47  ;;  %v626_v52 = vmul.f32 %v623_v42, %v1898_v0 }
 0xe4e   :  { %v852_v56 = vmul.f32 0.0, %v849_v50 }
 0xea3   :  { %v629_v41 = vpop.permute.xlu0 %628 }
 0xea4   :  { %v631_v43 = vmul.f32 %v629_v41, %v623_v42 }
 0xea6   :  { %633 = vrot.lane.b32.xlu2 %v631_v43, %s1693_s13 }
 0xeab   :  { %v855_v49 = vpop.permute.xlu1 %854 }
 0xeac   :  { %v857_v51 = vmul.f32 %v855_v49, %v849_v50 }
 0xeae   :  { %859 = vrot.lane.b32.xlu0 %v857_v51, %s1693_s13 }
 0xf00   :  { %v634_v53 = vpop.permute.xlu2 %633 }
 0xf01   :  { %v1944_v54 = vadd.f32 %v634_v53, %v626_v52 }
 0xf03   :  { %1516 = vtanh.f32 %v1944_v54 }
 0xf09   :  { %v1517_v55 = vpop.eup %1516 }
 0xf0a   :  { %639 = vrot.lane.b32.xlu1 %v1517_v55, %s1693_s13 }
 0xf20   :  { %v860_v13 = vpop.permute.xlu0 %859 }
 0xf21   :  { %v862_v57 = vadd.f32 %v860_v13, %v852_v56 }
 0xf23   :  { %1518 = vtanh.f32 %v862_v57 }
 0xf29   :  { %v1519_v58 = vpop.eup %1518 }
 0xf2a   :  { %865 = vrot.lane.b32.xlu2 %v1519_v58, %s1693_s13 }
 0xf7c   :  { %v640_v59 = vpop.permute.xlu1 %639 }
 0xf7d   :  { %v642_v60 = vmul.f32 %v640_v59, %v623_v42 }
 0xf7f   :  { %644 = vrot.lane.b32.xlu0 %v642_v60, %s1694_s14 }
 0xf84   :  { %v866_v61 = vpop.permute.xlu2 %865 }
 0xf85   :  { %v868_v62 = vmul.f32 %v866_v61, %v849_v50 }
 0xf87   :  { %871 = vrot.lane.b32.xlu1 %v868_v62, %s1694_s14 }
 0xff1   :  { %v645_v63 = vpop.permute.xlu0 %644 }
 0xff2   :  { %648 = vst.msk [vmem:[#allocation2 + $0x30] sm:$0xff] %vm96_vm0, %v645_v63  ;;  %1417 = vmatmul.msk.f32.vlgmr.msra.gmra.mxu2 %vm96_vm0, %v645_v63 }
 0xff3   :  { %1015 = vmatpush.msra.mxu2 %v1903_v4 }
 0xff5   :  { %1016 = vmatpush.msra.mxu2 %v1905_v5 }
 0xff7   :  { %1017 = vmatpush.msra.mxu2 %v1909_v6 }
 0xff9   :  { %v872_v0 = vpop.permute.xlu1 %871  ;;  %v723_v1 = vld [vmem:[#allocation2 + $0x30] sm:$0xff]  ;;  %1018 = vmatpush.msra.mxu2 %v1913_v7 }
 0xffa   :  { %1425 = vmatmul.msk.f32.gmra.mxu3 %vm96_vm0, %v723_v1  ;;  %1428 = vmatmul.msk.f32.vlgmr.msrb.gmra.mxu2 %vm96_vm0, %v872_v0  ;;  %v783_v0 = vpop.f32.mrf.mxu3 }
 0xffb   :  { %1143 = vmatpush.msrb.mxu2 %v1903_v4  ;;  %v784_v1 = vadd.f32 %v1936_v19, %v783_v0 }
 0xffd   :  { %1144 = vmatpush.msrb.mxu2 %v1905_v5 }
 0xfff   :  { %1145 = vmatpush.msrb.mxu2 %v1909_v6 }
0x1001   :  { %1146 = vmatpush.msrb.mxu2 %v1913_v7 }
0x1075   :  { %v1963_v2 = vpop.f32.mrf.mxu2 }
0x107d   :  { %v892_v11 = vpop.f32.mrf.mxu2 }
0x107e   :  { %v895_v16 = vadd.f32 %v892_v11, %v778_v8 }
0x1080   :  { %1520 = vtanh.f32 %v895_v16  ;;  %v1429_v18 = vmul.f32 -1.442695, %v895_v16 }
0x1082   :  { %1522 = vpow2.f32 %v1429_v18 }
0x1086   :  { %v1521_v17 = vpop.eup %1520 }
0x1087   :  { %918 = vrot.lane.b32.xlu2 %v1521_v17, %s1693_s13 }
0x1088   :  { %v1523_v9 = vpop.eup %1522 }
0x1089   :  { %v899_v20 = vadd.f32 1.0, %v1523_v9 }
0x108b   :  { %1524 = vrcp.f32 %v899_v20  ;;  %v911_v14 = vand.u32 2147483648, %v899_v20  ;;  %vm905_vm4 = vweird.f32 %v899_v20  ;;  %v909_v24 = vand.u32 2147483647, %v899_v20 }
0x108d   :  { %v912_v26 = vor.u32 1.1754944e-38, %v911_v14  ;;  %vm910_vm6 = vcmp.eq.f32.partialorder %v909_v24, 8.507059e+37 }
0x1091   :  { %v1525_v21 = vpop.eup %1524 }
0x1092   :  { %v901_v22 = vmul.f32 %v1525_v21, %v899_v20  ;;  %vm906_vm3 = vweird.f32 %v1525_v21 }
0x1093   :  { %vm907_vm5 = vmor %vm905_vm4, %vm906_vm3 }
0x1094   :  { %v902_v12 = vsub.f32 1.0, %v901_v22 }
0x1096   :  { %v903_v23 = vmul.f32 %v1525_v21, %v902_v12 }
0x1098   :  { %v904_v10 = vadd.f32 %v1525_v21, %v903_v23 }
0x109a   :  { %v908_v25 = vsel %vm907_vm5, %v1525_v21, %v904_v10 }
0x109b   :  { %v913_v28 = vsel %vm910_vm6, %v912_v26, %v908_v25 }
0x109c   :  { %v916_v30 = vmul.f32 %v913_v28, %v862_v57 }
0x10e1   :  { %v919_v27 = vpop.permute.xlu2 %918 }
0x10e2   :  { %v921_v29 = vmul.f32 %v919_v27, %v913_v28 }
0x10e4   :  { %923 = vrot.lane.b32.xlu0 %v921_v29, %s1693_s13 }
0x1156   :  { %v924_v31 = vpop.permute.xlu0 %923 }
0x1157   :  { %v926_v32 = vadd.f32 %v924_v31, %v916_v30  ;;  %v786_v31 = vpop.f32.mrf.mxu3 }
0x1159   :  { %1526 = vtanh.f32 %v926_v32 }
0x115f   :  { %v1527_v33 = vpop.eup %1526 }
0x1160   :  { %929 = vrot.lane.b32.xlu1 %v1527_v33, %s1693_s13 }
0x11d2   :  { %v930_v34 = vpop.permute.xlu1 %929 }
0x11d3   :  { %v932_v35 = vmul.f32 %v930_v34, %v913_v28 }
0x11d5   :  { %935 = vrot.lane.b32.xlu2 %v932_v35, %s1694_s14 }
0x122f   :  { %v936_v36 = vpop.permute.xlu2 %935 }
0x1230   :  { %1430 = vmatmul.msk.f32.vlgmr.msra.gmra.mxu1 %vm96_vm0, %v936_v36 }
0x1231   :  { %1207 = vmatpush.msra.mxu1 %v1903_v4 }
0x1233   :  { %1208 = vmatpush.msra.mxu1 %v1905_v5 }
0x1235   :  { %1209 = vmatpush.msra.mxu1 %v1909_v6 }
0x1237   :  { %1210 = vmatpush.msra.mxu1 %v1913_v7 }
0x12ad   :  { %v956_v39 = vpop.f32.mrf.mxu1 }
0x12ae   :  { %v959_v40 = vadd.f32 %v956_v39, %v781_v38 }
0x12b0   :  { %1528 = vtanh.f32 %v959_v40  ;;  %v1431_v42 = vmul.f32 -1.442695, %v959_v40 }
0x12b2   :  { %1530 = vpow2.f32 %v1431_v42 }
0x12b6   :  { %v1529_v41 = vpop.eup %1528 }
0x12b7   :  { %982 = vrot.lane.b32.xlu0 %v1529_v41, %s1693_s13 }
0x12b8   :  { %v1531_v43 = vpop.eup %1530 }
0x12b9   :  { %v963_v44 = vadd.f32 1.0, %v1531_v43 }
0x12bb   :  { %1532 = vrcp.f32 %v963_v44  ;;  %v975_v50 = vand.u32 2147483648, %v963_v44  ;;  %vm969_vm8 = vweird.f32 %v963_v44  ;;  %v973_v51 = vand.u32 2147483647, %v963_v44 }
0x12bd   :  { %v976_v53 = vor.u32 1.1754944e-38, %v975_v50  ;;  %vm974_vm10 = vcmp.eq.f32.partialorder %v973_v51, 8.507059e+37 }
0x12c1   :  { %v1533_v45 = vpop.eup %1532 }
0x12c2   :  { %v965_v46 = vmul.f32 %v1533_v45, %v963_v44  ;;  %vm970_vm7 = vweird.f32 %v1533_v45 }
0x12c3   :  { %vm971_vm9 = vmor %vm969_vm8, %vm970_vm7 }
0x12c4   :  { %v966_v47 = vsub.f32 1.0, %v965_v46 }
0x12c6   :  { %v967_v48 = vmul.f32 %v1533_v45, %v966_v47 }
0x12c8   :  { %v968_v49 = vadd.f32 %v1533_v45, %v967_v48 }
0x12ca   :  { %v972_v52 = vsel %vm971_vm9, %v1533_v45, %v968_v49 }
0x12cb   :  { %v977_v56 = vsel %vm974_vm10, %v976_v53, %v972_v52 }
0x12cc   :  { %v980_v57 = vmul.f32 %v977_v56, %v926_v32  ;;  %v787_v32 = vadd.f32 %v1936_v19, %v786_v31 }
0x1329   :  { %v983_v55 = vpop.permute.xlu0 %982 }
0x132a   :  { %v985_v13 = vmul.f32 %v983_v55, %v977_v56 }
0x132c   :  { %987 = vrot.lane.b32.xlu1 %v985_v13, %s1693_s13 }
0x139e   :  { %v988_v58 = vpop.permute.xlu1 %987 }
0x139f   :  { %v990_v59 = vadd.f32 %v988_v58, %v980_v57  ;;  %v789_v58 = vpop.f32.mrf.mxu3 }
0x13a1   :  { %1534 = vtanh.f32 %v990_v59 }
0x13a7   :  { %v1535_v60 = vpop.eup %1534 }
0x13a8   :  { %993 = vrot.lane.b32.xlu2 %v1535_v60, %s1693_s13 }
0x1402   :  { %v994_v61 = vpop.permute.xlu2 %993 }
0x1403   :  { %v996_v62 = vmul.f32 %v994_v61, %v977_v56 }
0x1405   :  { %999 = vrot.lane.b32.xlu0 %v996_v62, %s1694_s14 }
0x1477   :  { %v1000_v63 = vpop.permute.xlu0 %999 }
0x1478   :  { %1432 = vmatmul.msk.f32.vlgmr.msra.gmra.mxu2 %vm96_vm0, %v1000_v63 }
0x1479   :  { %1271 = vmatpush.msra.mxu2 %v1903_v4 }
0x147b   :  { %1272 = vmatpush.msra.mxu2 %v1905_v5 }
0x147d   :  { %1273 = vmatpush.msra.mxu2 %v1909_v6 }
0x147f   :  { %1274 = vmatpush.msra.mxu2 %v1913_v7 }
0x14fb   :  { %v1020_v3 = vpop.f32.mrf.mxu2 }
0x14fc   :  { %v1023_v8 = vadd.f32 %v1020_v3, %v784_v1 }
0x14fe   :  { %1536 = vtanh.f32 %v1023_v8  ;;  %v1433_v16 = vmul.f32 -1.442695, %v1023_v8 }
0x1500   :  { %1538 = vpow2.f32 %v1433_v16 }
0x1504   :  { %v1537_v11 = vpop.eup %1536 }
0x1505   :  { %1046 = vrot.lane.b32.xlu1 %v1537_v11, %s1693_s13 }
0x1506   :  { %v1539_v17 = vpop.eup %1538 }
0x1507   :  { %v1027_v18 = vadd.f32 1.0, %v1539_v17 }
0x1509   :  { %1540 = vrcp.f32 %v1027_v18  ;;  %v1039_v7 = vand.u32 2147483648, %v1027_v18  ;;  %vm1033_vm12 = vweird.f32 %v1027_v18  ;;  %v1037_v21 = vand.u32 2147483647, %v1027_v18 }
0x150b   :  { %v1040_v12 = vor.u32 1.1754944e-38, %v1039_v7  ;;  %vm1038_vm14 = vcmp.eq.f32.partialorder %v1037_v21, 8.507059e+37 }
0x150f   :  { %v1541_v4 = vpop.eup %1540 }
0x1510   :  { %v1029_v5 = vmul.f32 %v1541_v4, %v1027_v18  ;;  %vm1034_vm11 = vweird.f32 %v1541_v4 }
0x1511   :  { %vm1035_vm13 = vmor %vm1033_vm12, %vm1034_vm11 }
0x1512   :  { %v1030_v9 = vsub.f32 1.0, %v1029_v5 }
0x1514   :  { %v1031_v6 = vmul.f32 %v1541_v4, %v1030_v9  ;;  %v1584_v9 = vld [vmem:[%s2065_s3] ss:$0 sm:$0xff] }
0x1516   :  { %v1032_v20 = vadd.f32 %v1541_v4, %v1031_v6  ;;  %v160_v6 = vadd.f32 %v1584_v9, %v1865_v15 }
0x1518   :  { %v1036_v22 = vsel %vm1035_vm13, %v1541_v4, %v1032_v20  ;;  %v673_v7 = vadd.f32 %v1963_v2, %v160_v6  ;;  %v1320_v6 = vld [vmem:[%s2069_s7 + $0x18] sm:$0xff] }
0x1519   :  { %v1041_v10 = vsel %vm1038_vm14, %v1040_v12, %v1036_v22 }
0x151a   :  { %v1044_v24 = vmul.f32 %v1041_v10, %v990_v59  ;;  %v790_v59 = vadd.f32 %v1936_v19, %v789_v58 }
0x1577   :  { %v1047_v23 = vpop.permute.xlu1 %1046 }
0x1578   :  { %v1049_v14 = vmul.f32 %v1047_v23, %v1041_v10 }
0x157a   :  { %1051 = vrot.lane.b32.xlu2 %v1049_v14, %s1693_s13 }
0x15d4   :  { %v1052_v25 = vpop.permute.xlu2 %1051 }
0x15d5   :  { %v1054_v26 = vadd.f32 %v1052_v25, %v1044_v24  ;;  %v1418_v25 = vmul.f32 -1.442695, %v673_v7 }
0x15d7   :  { %1542 = vtanh.f32 %v1054_v26 }
0x15dd   :  { %v1543_v27 = vpop.eup %1542 }
0x15de   :  { %1057 = vrot.lane.b32.xlu0 %v1543_v27, %s1693_s13 }
0x1650   :  { %v1058_v28 = vpop.permute.xlu0 %1057 }
0x1651   :  { %v1060_v29 = vmul.f32 %v1058_v28, %v1041_v10 }
0x1653   :  { %1063 = vrot.lane.b32.xlu1 %v1060_v29, %s1694_s14 }
0x16c5   :  { %v1064_v30 = vpop.permute.xlu1 %1063 }
0x16c6   :  { %1434 = vmatmul.msk.f32.vlgmr.msrb.gmra.mxu1 %vm96_vm0, %v1064_v30 }
0x1743   :  { %v1084_v33 = vpop.f32.mrf.mxu1 }
0x1744   :  { %v1087_v34 = vadd.f32 %v1084_v33, %v787_v32 }
0x1746   :  { %1544 = vtanh.f32 %v1087_v34  ;;  %v1435_v36 = vmul.f32 -1.442695, %v1087_v34 }
0x1748   :  { %1546 = vpow2.f32 %v1435_v36 }
0x174c   :  { %v1545_v35 = vpop.eup %1544 }
0x174d   :  { %1110 = vrot.lane.b32.xlu2 %v1545_v35, %s1693_s13 }
0x174e   :  { %v1547_v37 = vpop.eup %1546 }
0x174f   :  { %v1091_v38 = vadd.f32 1.0, %v1547_v37 }
0x1751   :  { %1548 = vrcp.f32 %v1091_v38  ;;  %v1103_v44 = vand.u32 2147483648, %v1091_v38  ;;  %vm1097_vm1 = vweird.f32 %v1091_v38  ;;  %v1101_v45 = vand.u32 2147483647, %v1091_v38 }
0x1753   :  { %v1104_v47 = vor.u32 1.1754944e-38, %v1103_v44  ;;  %vm1102_vm3 = vcmp.eq.f32.partialorder %v1101_v45, 8.507059e+37 }
0x1757   :  { %v1549_v39 = vpop.eup %1548 }
0x1758   :  { %v1093_v40 = vmul.f32 %v1549_v39, %v1091_v38  ;;  %vm1098_vm15 = vweird.f32 %v1549_v39 }
0x1759   :  { %vm1099_vm2 = vmor %vm1097_vm1, %vm1098_vm15 }
0x175a   :  { %v1094_v41 = vsub.f32 1.0, %v1093_v40 }
0x175c   :  { %v1095_v42 = vmul.f32 %v1549_v39, %v1094_v41 }
0x175e   :  { %v1096_v43 = vadd.f32 %v1549_v39, %v1095_v42  ;;  %v792_v42 = vpop.f32.mrf.mxu3 }
0x1760   :  { %v1100_v46 = vsel %vm1099_vm2, %v1549_v39, %v1096_v43  ;;  %v793_v43 = vadd.f32 %v1936_v19, %v792_v42  ;;  %v1323_v42 = vld [vmem:[%s2069_s7 + $0x30] sm:$0xff] }
0x1761   :  { %v1105_v49 = vsel %vm1102_vm3, %v1104_v47, %v1100_v46 }
0x1762   :  { %v1108_v51 = vmul.f32 %v1105_v49, %v1054_v26 }
0x17a7   :  { %v1111_v48 = vpop.permute.xlu2 %1110 }
0x17a8   :  { %v1113_v50 = vmul.f32 %v1111_v48, %v1105_v49 }
0x17aa   :  { %1115 = vrot.lane.b32.xlu0 %v1113_v50, %s1693_s13 }
0x181c   :  { %v1116_v52 = vpop.permute.xlu0 %1115 }
0x181d   :  { %v1118_v53 = vadd.f32 %v1116_v52, %v1108_v51 }
0x181f   :  { %1550 = vtanh.f32 %v1118_v53 }
0x1825   :  { %v1551_v55 = vpop.eup %1550 }
0x1826   :  { %1121 = vrot.lane.b32.xlu1 %v1551_v55, %s1693_s13 }
0x1898   :  { %v1122_v56 = vpop.permute.xlu1 %1121 }
0x1899   :  { %v1124_v13 = vmul.f32 %v1122_v56, %v1105_v49 }
0x189b   :  { %1127 = vrot.lane.b32.xlu2 %v1124_v13, %s1694_s14 }
0x18f5   :  { %v1128_v57 = vpop.permute.xlu2 %1127 }
0x18f6   :  { %1436 = vmatmul.msk.f32.vlgmr.msrb.gmra.mxu2 %vm96_vm0, %v1128_v57 }
0x18f7   :  { %1364 = vmatpush.msrb.mxu2 %v1320_v6 }
0x1979   :  { %v1148_v60 = vpop.f32.mrf.mxu2 }
0x197a   :  { %v1151_v61 = vadd.f32 %v1148_v60, %v790_v59 }
0x197c   :  { %1552 = vtanh.f32 %v1151_v61  ;;  %v1437_v63 = vmul.f32 -1.442695, %v1151_v61 }
0x197e   :  { %1554 = vpow2.f32 %v1437_v63 }
0x1982   :  { %v1553_v62 = vpop.eup %1552 }
0x1983   :  { %1174 = vrot.lane.b32.xlu0 %v1553_v62, %s1693_s13 }
0x1984   :  { %v1555_v0 = vpop.eup %1554 }
0x1985   :  { %v1155_v1 = vadd.f32 1.0, %v1555_v0 }
0x1987   :  { %1556 = vrcp.f32 %v1155_v1  ;;  %v1167_v18 = vand.u32 2147483648, %v1155_v1  ;;  %vm1161_vm5 = vweird.f32 %v1155_v1  ;;  %v1165_v4 = vand.u32 2147483647, %v1155_v1 }
0x1988   :  { %1558 = vtanh.f32 %v673_v7  ;;  %v1318_v7 = vld [vmem:[%s2069_s7 + $0x8] sm:$0xff] }
0x1989   :  { %v1168_v20 = vor.u32 1.1754944e-38, %v1167_v18  ;;  %vm1166_vm7 = vcmp.eq.f32.partialorder %v1165_v4, 8.507059e+37 }
0x198d   :  { %v1557_v3 = vpop.eup %1556 }
0x198e   :  { %v1157_v8 = vmul.f32 %v1557_v3, %v1155_v1  ;;  %vm1162_vm4 = vweird.f32 %v1557_v3  ;;  %v1559_v23 = vpop.eup %1558 }
0x198f   :  { %vm1163_vm6 = vmor %vm1161_vm5, %vm1162_vm4 }
0x1990   :  { %v1158_v11 = vsub.f32 1.0, %v1157_v8 }
0x1992   :  { %v1159_v16 = vmul.f32 %v1557_v3, %v1158_v11 }
0x1994   :  { %v1160_v17 = vadd.f32 %v1557_v3, %v1159_v16 }
0x1996   :  { %v1164_v5 = vsel %vm1163_vm6, %v1557_v3, %v1160_v17 }
0x1997   :  { %v1169_v22 = vsel %vm1166_vm7, %v1168_v20, %v1164_v5  ;;  %v1319_v20 = vld [vmem:[%s2069_s7 + $0x10] sm:$0xff] }
0x1998   :  { %v1172_v10 = vmul.f32 %v1169_v22, %v1118_v53  ;;  %1365 = vmatpush.msrb.mxu2 %v1319_v20 }
0x199a   :  { %1366 = vmatpush.msrb.mxu2 %v1318_v7 }
0x19f5   :  { %v1175_v21 = vpop.permute.xlu0 %1174 }
0x19f6   :  { %v1177_v12 = vmul.f32 %v1175_v21, %v1169_v22  ;;  %v1317_v21 = vld [vmem:[%s2069_s7] sm:$0xff] }
0x19f7   :  { %1367 = vmatpush.msrb.mxu2 %v1317_v21 }
0x19f8   :  { %1179 = vrot.lane.b32.xlu1 %v1177_v12, %s1693_s13 }
0x1a00   :  { %696 = vrot.lane.b32.xlu1 %v1559_v23, %s1693_s13 }
0x1a6a   :  { %v1180_v14 = vpop.permute.xlu1 %1179 }
0x1a6b   :  { %v2006_v24 = vadd.f32 %v1180_v14, %v1172_v10 }
0x1a6d   :  { %1560 = vtanh.f32 %v2006_v24 }
0x1a6e   :  { %1562 = vpow2.f32 %v1418_v25 }
0x1a72   :  { %v697_v38 = vpop.permute.xlu1 %696 }
0x1a73   :  { %v1561_v15 = vpop.eup %1560 }
0x1a74   :  { %1185 = vrot.lane.b32.xlu2 %v1561_v15, %s1693_s13  ;;  %v1563_v2 = vpop.eup %1562 }
0x1a75   :  { %v677_v26 = vadd.f32 1.0, %v1563_v2 }
0x1a77   :  { %1564 = vrcp.f32 %v677_v26  ;;  %v689_v34 = vand.u32 2147483648, %v677_v26  ;;  %vm683_vm9 = vweird.f32 %v677_v26  ;;  %v687_v35 = vand.u32 2147483647, %v677_v26 }
0x1a79   :  { %v690_v37 = vor.u32 1.1754944e-38, %v689_v34  ;;  %vm688_vm11 = vcmp.eq.f32.partialorder %v687_v35, 8.507059e+37 }
0x1a7d   :  { %v1565_v27 = vpop.eup %1564 }
0x1a7e   :  { %v679_v28 = vmul.f32 %v1565_v27, %v677_v26  ;;  %vm684_vm8 = vweird.f32 %v1565_v27 }
0x1a7f   :  { %vm685_vm10 = vmor %vm683_vm9, %vm684_vm8 }
0x1a80   :  { %v680_v29 = vsub.f32 1.0, %v679_v28 }
0x1a82   :  { %v681_v30 = vmul.f32 %v1565_v27, %v680_v29 }
0x1a84   :  { %v682_v32 = vadd.f32 %v1565_v27, %v681_v30 }
0x1a86   :  { %v686_v36 = vsel %vm685_vm10, %v1565_v27, %v682_v32 }
0x1a87   :  { %v691_v39 = vsel %vm688_vm11, %v690_v37, %v686_v36 }
0x1a88   :  { %v699_v40 = vmul.f32 %v697_v38, %v691_v39  ;;  %v694_v47 = vmul.f32 %v691_v39, %v1944_v54 }
0x1ace   :  { %v1186_v31 = vpop.permute.xlu2 %1185 }
0x1acf   :  { %v1188_v33 = vmul.f32 %v1186_v31, %v1169_v22 }
0x1ad1   :  { %1191 = vrot.lane.b32.xlu0 %v1188_v33, %s1694_s14 }
0x1ad9   :  { %701 = vrot.lane.b32.xlu0 %v699_v40, %s1693_s13 }
0x1b43   :  { %v1192_v41 = vpop.permute.xlu0 %1191 }
0x1b44   :  { %1438 = vmatmul.msk.f32.vlgmr.msra.gmra.mxu1 %vm96_vm0, %v1192_v41  ;;  %v1324_v41 = vld [vmem:[%s2069_s7 + $0x38] sm:$0xff] }
0x1b45   :  { %1342 = vmatpush.msrb.mxu1 %v1324_v41 }
0x1b47   :  { %1343 = vmatpush.msrb.mxu1 %v1323_v42 }
0x1b4b   :  { %v702_v46 = vpop.permute.xlu0 %701 }
0x1b4c   :  { %v704_v48 = vadd.f32 %v702_v46, %v694_v47 }
0x1bc1   :  { %v1212_v44 = vpop.f32.mrf.mxu1 }
0x1bc2   :  { %v1215_v45 = vadd.f32 %v1212_v44, %v793_v43  ;;  %v1322_v43 = vld [vmem:[%s2069_s7 + $0x28] sm:$0xff]  ;;  %v1321_v44 = vld [vmem:[%s2069_s7 + $0x20] sm:$0xff]  ;;  %s1385_s7 = sshll.u32 %s2071_s9, 4  ;;  %s1386_s7 = int_to_ptr.hbm [resolvable:$true] %s1385_s7 }
0x1bc3   :  { %1344 = vmatpush.msrb.mxu1 %v1322_v43 }
0x1bc4   :  { %1566 = vtanh.f32 %v1215_v45  ;;  %v1439_v51 = vmul.f32 -1.442695, %v1215_v45 }
0x1bc5   :  { %1568 = vtanh.f32 %v704_v48  ;;  %1345 = vmatpush.msrb.mxu1 %v1321_v44  ;;  %v1455_v48 = vld [vmem:[%s2070_s8] ss:$0 sm:$0xff] }
0x1bc6   :  { %1570 = vpow2.f32 %v1439_v51 }
0x1bca   :  { %v1567_v49 = vpop.eup %1566 }
0x1bcb   :  { %1238 = vrot.lane.b32.xlu2 %v1567_v49, %s1693_s13  ;;  %v1569_v50 = vpop.eup %1568 }
0x1bcc   :  { %v1571_v52 = vpop.eup %1570 }
0x1bcd   :  { %v1219_v53 = vadd.f32 1.0, %v1571_v52 }
0x1bcf   :  { %1572 = vrcp.f32 %v1219_v53  ;;  %v1231_v54 = vand.u32 2147483648, %v1219_v53  ;;  %vm1225_vm13 = vweird.f32 %v1219_v53  ;;  %v1229_v59 = vand.u32 2147483647, %v1219_v53 }
0x1bd1   :  { %v1232_v61 = vor.u32 1.1754944e-38, %v1231_v54  ;;  %vm1230_vm15 = vcmp.eq.f32.partialorder %v1229_v59, 8.507059e+37 }
0x1bd3   :  { %707 = vrot.lane.b32.xlu2 %v1569_v50, %s1693_s13 }
0x1bd5   :  { %v1573_v55 = vpop.eup %1572 }
0x1bd6   :  { %v1221_v56 = vmul.f32 %v1573_v55, %v1219_v53  ;;  %vm1226_vm12 = vweird.f32 %v1573_v55 }
0x1bd7   :  { %vm1227_vm14 = vmor %vm1225_vm13, %vm1226_vm12 }
0x1bd8   :  { %v1222_v13 = vsub.f32 1.0, %v1221_v56 }
0x1bda   :  { %v1223_v57 = vmul.f32 %v1573_v55, %v1222_v13 }
0x1bdc   :  { %v1224_v58 = vadd.f32 %v1573_v55, %v1223_v57 }
0x1bde   :  { %v1228_v60 = vsel %vm1227_vm14, %v1573_v55, %v1224_v58 }
0x1bdf   :  { %v1233_v63 = vsel %vm1230_vm15, %v1232_v61, %v1228_v60 }
0x1be0   :  { %v1236_v8 = vmul.f32 %v1233_v63, %v2006_v24 }
0x1c25   :  { %v1239_v62 = vpop.permute.xlu2 %1238 }
0x1c26   :  { %v1241_v0 = vmul.f32 %v1239_v62, %v1233_v63 }
0x1c28   :  { %1243 = vrot.lane.b32.xlu1 %v1241_v0, %s1693_s13 }
0x1c2d   :  { %v708_v1 = vpop.permute.xlu2 %707 }
0x1c2e   :  { %v710_v3 = vmul.f32 %v708_v1, %v691_v39 }
0x1c30   :  { %712 = vrot.lane.b32.xlu1 %v710_v3, %s1694_s14 }
0x1c9a   :  { %v1244_v11 = vpop.permute.xlu1 %1243 }
0x1c9b   :  { %v1246_v16 = vadd.f32 %v1244_v11, %v1236_v8 }
0x1c9d   :  { %1574 = vtanh.f32 %v1246_v16 }
0x1ca2   :  { %v713_v17 = vpop.permute.xlu1 %712 }
0x1ca3   :  { %v1575_v18 = vpop.eup %1574  ;;  %716 = vst.msk [vmem:[#allocation2 + $0x38] sm:$0xff] %vm96_vm0, %v713_v17 }
0x1ca4   :  { %1249 = vrot.lane.b32.xlu0 %v1575_v18, %s1693_s13 }
0x1caa   :  { %v724_v4 = vld [vmem:[#allocation2 + $0x38] sm:$0xff] }
0x1cab   :  { %1426 = vmatmul.msk.f32.gmra.mxu3 %vm96_vm0, %v724_v4 }
0x1d16   :  { %v1250_v5 = vpop.permute.xlu0 %1249 }
0x1d17   :  { %v1252_v9 = vmul.f32 %v1250_v5, %v1233_v63 }
0x1d19   :  { %1255 = vrot.lane.b32.xlu2 %v1252_v9, %s1694_s14 }
0x1d2e   :  { %v795_v12 = vpop.f32.mrf.mxu3 }
0x1d2f   :  { %v796_v23 = vadd.f32 %v1936_v19, %v795_v12 }
0x1d73   :  { %v1256_v22 = vpop.permute.xlu2 %1255 }
0x1d74   :  { %1440 = vmatmul.msk.f32.vlgmr.msra.gmra.mxu2 %vm96_vm0, %v1256_v22 }
0x1d7c   :  { %1443 = vmatmul.msk.f32.vlgmr.msrb.gmra.mxu2 %vm96_vm0, %v713_v17 }
0x1df7   :  { %v1276_v10 = vpop.f32.mrf.mxu2 }
0x1df8   :  { %v1279_v14 = vadd.f32 %v1276_v10, %v796_v23 }
0x1dfa   :  { %1576 = vtanh.f32 %v1279_v14  ;;  %v1441_v15 = vmul.f32 -1.442695, %v1279_v14 }
0x1dfc   :  { %1578 = vpow2.f32 %v1441_v15 }
0x1dff   :  { %v1369_v49 = vpop.f32.mrf.mxu2 }
0x1e00   :  { %v1577_v24 = vpop.eup %1576 }
0x1e01   :  { %1302 = vrot.lane.b32.xlu0 %v1577_v24, %s1693_s13 }
0x1e02   :  { %v1579_v25 = vpop.eup %1578 }
0x1e03   :  { %v1283_v2 = vadd.f32 1.0, %v1579_v25 }
0x1e05   :  { %1580 = vrcp.f32 %v1283_v2  ;;  %v1295_v31 = vand.u32 2147483648, %v1283_v2  ;;  %vm1289_vm2 = vweird.f32 %v1283_v2  ;;  %v1293_v19 = vand.u32 2147483647, %v1283_v2 }
0x1e07   :  { %v1296_v33 = vor.u32 1.1754944e-38, %v1295_v31  ;;  %vm1294_vm4 = vcmp.eq.f32.partialorder %v1293_v19, 8.507059e+37 }
0x1e0b   :  { %v1581_v26 = vpop.eup %1580 }
0x1e0c   :  { %v1285_v27 = vmul.f32 %v1581_v26, %v1283_v2  ;;  %vm1290_vm1 = vweird.f32 %v1581_v26 }
0x1e0d   :  { %vm1291_vm3 = vmor %vm1289_vm2, %vm1290_vm1 }
0x1e0e   :  { %v1286_v28 = vsub.f32 1.0, %v1285_v27 }
0x1e10   :  { %v1287_v29 = vmul.f32 %v1581_v26, %v1286_v28 }
0x1e12   :  { %v1288_v30 = vadd.f32 %v1581_v26, %v1287_v29 }
0x1e14   :  { %v1292_v32 = vsel %vm1291_vm3, %v1581_v26, %v1288_v30 }
0x1e15   :  { %v1297_v35 = vsel %vm1294_vm4, %v1296_v33, %v1292_v32 }
0x1e16   :  { %v1300_v37 = vmul.f32 %v1297_v35, %v1246_v16 }
0x1e73   :  { %v1303_v34 = vpop.permute.xlu0 %1302 }
0x1e74   :  { %v1305_v36 = vmul.f32 %v1303_v34, %v1297_v35 }
0x1e76   :  { %1307 = vrot.lane.b32.xlu1 %v1305_v36, %s1693_s13 }
0x1ee8   :  { %v1308_v38 = vpop.permute.xlu1 %1307 }
0x1ee9   :  { %v1310_v39 = vadd.f32 %v1308_v38, %v1300_v37 }
0x1eeb   :  { %1582 = vtanh.f32 %v1310_v39 }
0x1ef1   :  { %v1583_v40 = vpop.eup %1582 }
0x1ef2   :  { %1313 = vrot.lane.b32.xlu2 %v1583_v40, %s1693_s13 }
0x1f4c   :  { %v1314_v45 = vpop.permute.xlu2 %1313 }
0x1f4d   :  { %v1316_v46 = vmul.f32 %v1314_v45, %v1297_v35 }
0x1f4f   :  { %1326 = vrot.lane.b32.xlu0 %v1316_v46, %s1694_s14 }
0x1fc1   :  { %v1327_v47 = vpop.permute.xlu0 %1326 }
0x1fc2   :  { %1442 = vmatmul.msk.f32.vlgmr.msrb.gmra.mxu1 %vm96_vm0, %v1327_v47 }
0x203f   :  { %v1347_v50 = vpop.f32.mrf.mxu1 }
0x2040   :  { %v1370_v51 = vadd.f32 %v1369_v49, %v1347_v50 }
0x2042   :  { %v1376_v52 = vadd.f32 %v1455_v48, %v1370_v51 }
0x2044   :  { %1377 = vst [vmem:[#allocation10] sm:$0xff] %v1376_v52 }
0x2045   :  { %1388 = dma.vmem_to_hbm [thread:$0]  %s1384_s24, 128, %s1386_s7, [#allocation6]  }
0x2046   :  { %1685 = dma.done.wait [#allocation6], 128  }
0x2047   :  { %1686 = vsyncadd [#allocation6], 4294967168 }
0x2048   :  { %1393 = vsyncpa [#allocation5], 1 }
0x2049   :  { %1394 = vsyncpa [#allocation8], 1 }
0x204a   :  { %1395 = vsyncpa [#allocation6], 1 }

</bundles_post_ra>
